<compile_context>
chip_gen: v5e
topology: v5e:2x2
jax: 0.10.0
libtpu: 0.0.40
codegen_flags: <defaults>
</compile_context>

<pallas_src>
import math
import jax
import jax.numpy as jnp
from jax.experimental import pallas as pl
from jax.experimental.pallas import tpu as pltpu

# ---------------- model config (small, lane-friendly) ----------------
VOCAB = 256
BLOCK = 32           # max block_size (for pos embeddings / causal mask)
EMBD = 128           # n_embd
NHEAD = 8
NKV = 2
NLAYER = 2
NEXP = 4             # num_experts
TOPK = 2             # num_experts_per_tok
EPS = 1e-6
HEAD_DIM = EMBD // NHEAD
NREP = NHEAD // NKV
KVC = NKV * HEAD_DIM


# ---------------- fused attention block kernel ----------------
# out = h + Wo( GQA( RMSNorm(h) ) )    per batch element
def _attn_block_kernel(x_ref, w_ref, wqkv_ref, wo_ref, o_ref):
    x = x_ref[0].astype(jnp.float32)                          # (T, C)
    T = x.shape[0]

    # fused RMSNorm (f32)
    ms = jnp.mean(x * x, axis=-1, keepdims=True)
    xn = x * jax.lax.rsqrt(ms + EPS) * w_ref[...]             # (T, C)

    # fused QKV projection: one (T,C)@(C, C+2*KVC) bf16 matmul
    qkv = jnp.dot(xn.astype(jnp.bfloat16), wqkv_ref[...],
                  preferred_element_type=jnp.float32)         # (T, C+2*KVC) f32
    xq = qkv[:, :EMBD]
    xk = qkv[:, EMBD:EMBD + KVC]
    xv = qkv[:, EMBD + KVC:]
    scale = 1.0 / math.sqrt(HEAD_DIM)

    # additive causal bias shared by every head: rows are (rep, t) flattened.
    rq = jax.lax.broadcasted_iota(jnp.int32, (NREP * T, T), 0) % T
    ck = jax.lax.broadcasted_iota(jnp.int32, (NREP * T, T), 1)
    bias = jnp.where(rq >= ck, 0.0, -1e30)                    # (NREP*T, T) f32

    out_cols = []
    for g in range(NKV):                                      # 2 kv groups, static
        # stack the NREP query heads of this group along the row axis
        qg = jnp.concatenate(
            [xq[:, (g * NREP + r) * HEAD_DIM:(g * NREP + r + 1) * HEAD_DIM]
             for r in range(NREP)], axis=0)                   # (NREP*T, Dh)
        kg = xk[:, g * HEAD_DIM:(g + 1) * HEAD_DIM]           # (T, Dh)
        vg = xv[:, g * HEAD_DIM:(g + 1) * HEAD_DIM]           # (T, Dh)

        s = jax.lax.dot_general(
            qg.astype(jnp.bfloat16), kg.astype(jnp.bfloat16),
            (((1,), (1,)), ((), ())),
            preferred_element_type=jnp.float32) * scale       # (NREP*T, T) f32
        s = s + bias
        m = jnp.max(s, axis=-1, keepdims=True)
        p = jnp.exp(s - m)
        p = p * pl.reciprocal(jnp.sum(p, axis=-1, keepdims=True), approx=True)
        og = jnp.dot(p.astype(jnp.bfloat16), vg.astype(jnp.bfloat16),
                     preferred_element_type=jnp.float32)      # (NREP*T, Dh) f32
        # unstack back to (T, Dh) column blocks, head order g*NREP + r
        out_cols.extend([og[r * T:(r + 1) * T, :] for r in range(NREP)])

    attn = jnp.concatenate(out_cols, axis=1)                  # (T, C)
    out = jnp.dot(attn.astype(jnp.bfloat16), wo_ref[...],
                  preferred_element_type=jnp.float32)         # single Wo matmul
    o_ref[0] = (x + out).astype(o_ref.dtype)                  # fused residual


def attn_block(h, norm_w, wqkv, wo):
    B, T, C = h.shape
    return pl.pallas_call(
        _attn_block_kernel,
        out_shape=jax.ShapeDtypeStruct((B, T, C), h.dtype),
        grid=(B,),
        in_specs=[
            pl.BlockSpec((1, T, C), lambda b: (b, 0, 0)),
            pl.BlockSpec((1, C), lambda b: (0, 0)),
            pl.BlockSpec((C, C + 2 * KVC), lambda b: (0, 0)),
            pl.BlockSpec((C, C), lambda b: (0, 0)),
        ],
        out_specs=pl.BlockSpec((1, T, C), lambda b: (b, 0, 0)),
        compiler_params=pltpu.CompilerParams(dimension_semantics=("parallel",)),
    )(h, norm_w, wqkv, wo)


# ---------------- fused MoE block kernel ----------------
# out = h + MoE( RMSNorm(h) )   on a (ROWB, C) row tile of the (B*T, C) activations
def _moe_block_kernel(x_ref, w_ref, gw_ref, ew_ref, o_ref):
    x = x_ref[...].astype(jnp.float32)                        # (N, C)
    ms = jnp.mean(x * x, axis=-1, keepdims=True)
    xn = x * jax.lax.rsqrt(ms + EPS) * w_ref[...]             # fused RMSNorm

    # gating kept in f32
    logits = jnp.dot(xn, gw_ref[...], preferred_element_type=jnp.float32)  # (N, E)
    N, E = logits.shape
    eidx = jax.lax.broadcasted_iota(jnp.int32, (N, E), 1)     # hoisted out of top-k loop

    # top-k via iterative masked argmax (first-occurrence / lowest index on ties)
    remaining = logits
    vals, sel = [], []
    for _ in range(TOPK):
        v = jnp.max(remaining, axis=-1, keepdims=True)
        is_max = remaining == v
        idx = jnp.min(jnp.where(is_max, eidx, E), axis=-1, keepdims=True)
        onehot = eidx == idx
        vals.append(v)
        sel.append(onehot)
        remaining = jnp.where(onehot, -1e30, remaining)

    # softmax over the k selected logits (f32, EUP reciprocal)
    m = vals[0]
    for v in vals[1:]:
        m = jnp.maximum(m, v)
    exps = [jnp.exp(v - m) for v in vals]
    denom = exps[0]
    for e_ in exps[1:]:
        denom = denom + e_
    inv = pl.reciprocal(denom, approx=True)

    wexp = jnp.zeros((N, E), jnp.float32)
    for j in range(TOPK):
        wexp = wexp + jnp.where(sel[j], exps[j] * inv, 0.0)

    # ONE stacked expert matmul: (N,C) @ (C, E*C)  -> lane-dense (N, E*C) output
    ye = jnp.dot(xn.astype(jnp.bfloat16), ew_ref[...],
                 preferred_element_type=jnp.float32)          # (N, E*C) f32

    C = x.shape[1]
    acc = jnp.zeros_like(x)
    for e in range(NEXP):                                     # cheap weighted combine
        acc = acc + wexp[:, e:e + 1] * ye[:, e * C:(e + 1) * C]
    o_ref[...] = (x + acc).astype(o_ref.dtype)                # fused residual


def moe_block(h2d, norm_w, gate_w, experts_stacked):
    N, C = h2d.shape
    rowb = 8 if N % 8 == 0 else N
    return pl.pallas_call(
        _moe_block_kernel,
        out_shape=jax.ShapeDtypeStruct((N, C), h2d.dtype),
        grid=(N // rowb,),
        in_specs=[
            pl.BlockSpec((rowb, C), lambda i: (i, 0)),
            pl.BlockSpec((1, C), lambda i: (0, 0)),
            pl.BlockSpec((C, NEXP), lambda i: (0, 0)),
            pl.BlockSpec((C, NEXP * C), lambda i: (0, 0)),
        ],
        out_specs=pl.BlockSpec((rowb, C), lambda i: (i, 0)),
        compiler_params=pltpu.CompilerParams(dimension_semantics=("parallel",)),
    )(h2d, norm_w, gate_w, experts_stacked)


# ---------------- fused output head: final RMSNorm + vocab projection ----------------
def _head_kernel(x_ref, w_ref, ow_ref, o_ref):
    x = x_ref[...].astype(jnp.float32)
    ms = jnp.mean(x * x, axis=-1, keepdims=True)
    xn = x * jax.lax.rsqrt(ms + EPS) * w_ref[...]
    o_ref[...] = jnp.dot(xn.astype(jnp.bfloat16), ow_ref[...],
                         preferred_element_type=jnp.float32).astype(o_ref.dtype)


def head_block(h2d, norm_w, out_w):
    N, C = h2d.shape
    V = out_w.shape[1]
    rowb = 8 if N % 8 == 0 else N
    return pl.pallas_call(
        _head_kernel,
        out_shape=jax.ShapeDtypeStruct((N, V), jnp.float32),
        grid=(N // rowb,),
        in_specs=[
            pl.BlockSpec((rowb, C), lambda i: (i, 0)),
            pl.BlockSpec((1, C), lambda i: (0, 0)),
            pl.BlockSpec((C, V), lambda i: (0, 0)),
        ],
        out_specs=pl.BlockSpec((rowb, V), lambda i: (i, 0)),
        compiler_params=pltpu.CompilerParams(dimension_semantics=("parallel",)),
    )(h2d, norm_w, out_w)


# ---------------- parameters (deterministic init, pre-fused / bf16 weights) ----------------
def init_params(key):
    ks = jax.random.split(key, 4 + NLAYER)

    def nrm(k, shape, scale=0.02):
        return (scale * jax.random.normal(k, shape)).astype(jnp.float32)

    params = {
        "tok_emb": nrm(ks[0], (VOCAB, EMBD)),
        "pos_emb": nrm(ks[1], (BLOCK, EMBD)),
        "norm_w": jnp.ones((1, EMBD), jnp.float32),
        "out_w": nrm(ks[2], (EMBD, VOCAB)).astype(jnp.bfloat16),
        "layers": [],
    }
    for i in range(NLAYER):
        lk = jax.random.split(ks[4 + i], 6)
        wq = nrm(lk[0], (EMBD, EMBD))
        wk = nrm(lk[1], (EMBD, KVC))
        wv = nrm(lk[2], (EMBD, KVC))
        experts = nrm(lk[5], (NEXP, EMBD, EMBD))              # (E, C_in, C_out)
        params["layers"].append({
            "attn_norm_w": jnp.ones((1, EMBD), jnp.float32),
            "ffn_norm_w": jnp.ones((1, EMBD), jnp.float32),
            # fused QKV weight: (C, C + 2*KVC), bf16 MXU operand
            "wqkv": jnp.concatenate([wq, wk, wv], axis=1).astype(jnp.bfloat16),
            "wo": nrm(lk[3], (EMBD, EMBD)).astype(jnp.bfloat16),
            "gate_w": nrm(lk[4], (EMBD, NEXP)),               # f32 gating
            # stacked expert weight: (C, E*C), column block e == expert e
            "experts_w": jnp.transpose(experts, (1, 0, 2))
                            .reshape(EMBD, NEXP * EMBD).astype(jnp.bfloat16),
        })
    return params


# ---------------- full MOE model forward ----------------
def moe_forward(params, input_ids):
    B, T = input_ids.shape
    # token + positional embeddings (gather = JAX glue)
    h = params["tok_emb"][input_ids] + params["pos_emb"][:T][None]      # (B, T, C)

    for lp in params["layers"]:
        # fused: RMSNorm + GQA + Wo + residual
        h = attn_block(h, lp["attn_norm_w"], lp["wqkv"], lp["wo"])
        # fused: RMSNorm + gating + stacked expert matmul + residual
        h2d = moe_block(h.reshape(B * T, EMBD), lp["ffn_norm_w"],
                        lp["gate_w"], lp["experts_w"])
        h = h2d.reshape(B, T, EMBD)

    # fused: final RMSNorm + output projection
    logits = head_block(h.reshape(B * T, EMBD), params["norm_w"], params["out_w"])
    return logits.reshape(B, T, VOCAB)


# TODO(synk): the autoregressive `generate()` sampling loop is host-side control
# flow and is not implemented as a kernel (only the forward pass is).

if __name__ == "__main__":
    key = jax.random.PRNGKey(0)
    pkey, ikey = jax.random.split(key)
    params = init_params(pkey)

    B, T = 2, 8
    input_ids = jax.random.randint(ikey, (B, T), 0, VOCAB, dtype=jnp.int32)

    out = jax.jit(moe_forward)(params, input_ids)
    jax.block_until_ready(out)
    assert out.shape == (B, T, VOCAB) and out.dtype == jnp.float32
    print("KERNEL_OK")
</pallas_src>

<mosaic_0001>
module attributes {stable_mosaic.version = 11 : i64} {
  func.func @_moe_block_kernel(%arg0: i32, %arg1: memref<8x128xf32, #tpu.memory_space<vmem>>, %arg2: memref<1x128xf32, #tpu.memory_space<vmem>>, %arg3: memref<128x4xf32, #tpu.memory_space<vmem>>, %arg4: memref<128x512xbf16, #tpu.memory_space<vmem>>, %arg5: memref<8x128xf32, #tpu.memory_space<vmem>>) attributes {dimension_semantics = [#tpu.dimension_semantics<parallel>], iteration_bounds = array<i64: 2>, scalar_prefetch = 0 : i64, scratch_operands = 0 : i64, tpu.core_type = #tpu.core_type<tc>, window_params = [{transform_indices = @transform_0, window_bounds = array<i64: 8, 128>}, {pipeline_mode = #tpu.pipeline_mode<synchronous>, transform_indices = @transform_1, window_bounds = array<i64: 1, 128>}, {pipeline_mode = #tpu.pipeline_mode<synchronous>, transform_indices = @transform_2, window_bounds = array<i64: 128, 4>}, {pipeline_mode = #tpu.pipeline_mode<synchronous>, transform_indices = @transform_3, window_bounds = array<i64: 128, 512>}, {transform_indices = @transform_4, window_bounds = array<i64: 8, 128>}]} {
    %c0 = arith.constant 0 : index
    %c0_0 = arith.constant 0 : index
    %0 = vector.load %arg1[%c0, %c0_0] : memref<8x128xf32, #tpu.memory_space<vmem>>, vector<8x128xf32>
    %1 = arith.mulf %0, %0 : vector<8x128xf32>
    %cst = arith.constant dense<0.000000e+00> : vector<8xf32>
    %2 = vector.multi_reduction <add>, %1, %cst [1] : vector<8x128xf32> to vector<8xf32>
    %3 = vector.shape_cast %2 : vector<8xf32> to vector<8x1xf32>
    %cst_1 = arith.constant 1.280000e+02 : f32
    %4 = vector.broadcast %cst_1 : f32 to vector<8x1xf32>
    %5 = arith.divf %3, %4 : vector<8x1xf32>
    %cst_2 = arith.constant 9.99999997E-7 : f32
    %6 = vector.broadcast %cst_2 : f32 to vector<8x1xf32>
    %7 = arith.addf %5, %6 : vector<8x1xf32>
    %8 = math.rsqrt %7 : vector<8x1xf32>
    %9 = vector.broadcast %8 : vector<8x1xf32> to vector<8x128xf32>
    %10 = arith.mulf %0, %9 : vector<8x128xf32>
    %c0_3 = arith.constant 0 : index
    %c0_4 = arith.constant 0 : index
    %11 = vector.load %arg2[%c0_3, %c0_4] : memref<1x128xf32, #tpu.memory_space<vmem>>, vector<1x128xf32>
    %12 = vector.broadcast %11 : vector<1x128xf32> to vector<8x128xf32>
    %13 = arith.mulf %10, %12 : vector<8x128xf32>
    %c0_5 = arith.constant 0 : index
    %c0_6 = arith.constant 0 : index
    %14 = vector.load %arg3[%c0_5, %c0_6] : memref<128x4xf32, #tpu.memory_space<vmem>>, vector<128x4xf32>
    %cst_7 = arith.constant dense<0.000000e+00> : vector<8x4xf32>
    %15 = tpu.matmul %13, %14, %cst_7 {dimension_numbers = #tpu.dot_dimension_numbers<[1], [0], [0], [1], [0, 0, 1, 1], [], []>} : vector<8x128xf32>, vector<128x4xf32>, vector<8x4xf32> -> vector<8x4xf32>
    %16 = tpu.iota {dimensions = array<i32: 1>} : vector<8x4xi32>
    %cst_8 = arith.constant dense<0xFF800000> : vector<8xf32>
    %17 = vector.multi_reduction <maximumf>, %15, %cst_8 [1] : vector<8x4xf32> to vector<8xf32>
    %18 = vector.shape_cast %17 : vector<8xf32> to vector<8x1xf32>
    %19 = vector.broadcast %18 : vector<8x1xf32> to vector<8x4xf32>
    %20 = arith.cmpf oeq, %15, %19 : vector<8x4xf32>
    %c4_i32 = arith.constant 4 : i32
    %21 = vector.broadcast %c4_i32 : i32 to vector<8x4xi32>
    %22 = arith.select %20, %16, %21 : vector<8x4xi1>, vector<8x4xi32>
    %cst_9 = arith.constant dense<2147483647> : vector<8xi32>
    %23 = vector.multi_reduction <minsi>, %22, %cst_9 [1] : vector<8x4xi32> to vector<8xi32>
    %24 = vector.shape_cast %23 : vector<8xi32> to vector<8x1xi32>
    %25 = vector.broadcast %24 : vector<8x1xi32> to vector<8x4xi32>
    %26 = arith.cmpi eq, %16, %25 : vector<8x4xi32>
    %cst_10 = arith.constant -1.000000e+30 : f32
    %27 = vector.broadcast %cst_10 : f32 to vector<8x4xf32>
    %28 = arith.select %26, %27, %15 : vector<8x4xi1>, vector<8x4xf32>
    %cst_11 = arith.constant dense<0xFF800000> : vector<8xf32>
    %29 = vector.multi_reduction <maximumf>, %28, %cst_11 [1] : vector<8x4xf32> to vector<8xf32>
    %30 = vector.shape_cast %29 : vector<8xf32> to vector<8x1xf32>
    %31 = vector.broadcast %30 : vector<8x1xf32> to vector<8x4xf32>
    %32 = arith.cmpf oeq, %28, %31 : vector<8x4xf32>
    %c4_i32_12 = arith.constant 4 : i32
    %33 = vector.broadcast %c4_i32_12 : i32 to vector<8x4xi32>
    %34 = arith.select %32, %16, %33 : vector<8x4xi1>, vector<8x4xi32>
    %cst_13 = arith.constant dense<2147483647> : vector<8xi32>
    %35 = vector.multi_reduction <minsi>, %34, %cst_13 [1] : vector<8x4xi32> to vector<8xi32>
    %36 = vector.shape_cast %35 : vector<8xi32> to vector<8x1xi32>
    %37 = vector.broadcast %36 : vector<8x1xi32> to vector<8x4xi32>
    %38 = arith.cmpi eq, %16, %37 : vector<8x4xi32>
    %39 = arith.maximumf %18, %30 : vector<8x1xf32>
    %40 = arith.subf %18, %39 : vector<8x1xf32>
    %41 = math.exp %40 : vector<8x1xf32>
    %42 = arith.subf %30, %39 : vector<8x1xf32>
    %43 = math.exp %42 : vector<8x1xf32>
    %44 = arith.addf %41, %43 : vector<8x1xf32>
    %45 = tpu.reciprocal %44 {approx = true} : vector<8x1xf32> -> vector<8x1xf32>
    %cst_14 = arith.constant 0.000000e+00 : f32
    %46 = vector.broadcast %cst_14 : f32 to vector<8x4xf32>
    %47 = arith.mulf %41, %45 : vector<8x1xf32>
    %cst_15 = arith.constant 0.000000e+00 : f32
    %48 = vector.shape_cast %47 : vector<8x1xf32> to vector<8x1xf32>
    %49 = vector.broadcast %48 : vector<8x1xf32> to vector<8x4xf32>
    %50 = vector.broadcast %cst_15 : f32 to vector<8x4xf32>
    %51 = arith.select %26, %49, %50 : vector<8x4xi1>, vector<8x4xf32>
    %52 = arith.addf %46, %51 : vector<8x4xf32>
    %53 = arith.mulf %43, %45 : vector<8x1xf32>
    %cst_16 = arith.constant 0.000000e+00 : f32
    %54 = vector.shape_cast %53 : vector<8x1xf32> to vector<8x1xf32>
    %55 = vector.broadcast %54 : vector<8x1xf32> to vector<8x4xf32>
    %56 = vector.broadcast %cst_16 : f32 to vector<8x4xf32>
    %57 = arith.select %38, %55, %56 : vector<8x4xi1>, vector<8x4xf32>
    %58 = arith.addf %52, %57 : vector<8x4xf32>
    %59 = arith.truncf %13 : vector<8x128xf32> to vector<8x128xbf16>
    %c0_17 = arith.constant 0 : index
    %c0_18 = arith.constant 0 : index
    %60 = vector.load %arg4[%c0_17, %c0_18] : memref<128x512xbf16, #tpu.memory_space<vmem>>, vector<128x512xbf16>
    %cst_19 = arith.constant dense<0.000000e+00> : vector<8x512xf32>
    %61 = tpu.matmul %59, %60, %cst_19 {dimension_numbers = #tpu.dot_dimension_numbers<[1], [0], [0], [1], [0, 0, 1, 1], [], []>} : vector<8x128xbf16>, vector<128x512xbf16>, vector<8x512xf32> -> vector<8x512xf32>
    %cst_20 = arith.constant 0.000000e+00 : f32
    %62 = vector.broadcast %cst_20 : f32 to vector<8x128xf32>
    %63 = vector.extract_strided_slice %58 {offsets = [0, 0], sizes = [8, 1], strides = [1, 1]} : vector<8x4xf32> to vector<8x1xf32>
    %64 = vector.extract_strided_slice %61 {offsets = [0, 0], sizes = [8, 128], strides = [1, 1]} : vector<8x512xf32> to vector<8x128xf32>
    %65 = vector.broadcast %63 : vector<8x1xf32> to vector<8x128xf32>
    %66 = arith.mulf %65, %64 : vector<8x128xf32>
    %67 = arith.addf %62, %66 : vector<8x128xf32>
    %68 = vector.extract_strided_slice %58 {offsets = [0, 1], sizes = [8, 1], strides = [1, 1]} : vector<8x4xf32> to vector<8x1xf32>
    %69 = vector.extract_strided_slice %61 {offsets = [0, 128], sizes = [8, 128], strides = [1, 1]} : vector<8x512xf32> to vector<8x128xf32>
    %70 = vector.broadcast %68 : vector<8x1xf32> to vector<8x128xf32>
    %71 = arith.mulf %70, %69 : vector<8x128xf32>
    %72 = arith.addf %67, %71 : vector<8x128xf32>
    %73 = vector.extract_strided_slice %58 {offsets = [0, 2], sizes = [8, 1], strides = [1, 1]} : vector<8x4xf32> to vector<8x1xf32>
    %74 = vector.extract_strided_slice %61 {offsets = [0, 256], sizes = [8, 128], strides = [1, 1]} : vector<8x512xf32> to vector<8x128xf32>
    %75 = vector.broadcast %73 : vector<8x1xf32> to vector<8x128xf32>
    %76 = arith.mulf %75, %74 : vector<8x128xf32>
    %77 = arith.addf %72, %76 : vector<8x128xf32>
    %78 = vector.extract_strided_slice %58 {offsets = [0, 3], sizes = [8, 1], strides = [1, 1]} : vector<8x4xf32> to vector<8x1xf32>
    %79 = vector.extract_strided_slice %61 {offsets = [0, 384], sizes = [8, 128], strides = [1, 1]} : vector<8x512xf32> to vector<8x128xf32>
    %80 = vector.broadcast %78 : vector<8x1xf32> to vector<8x128xf32>
    %81 = arith.mulf %80, %79 : vector<8x128xf32>
    %82 = arith.addf %77, %81 : vector<8x128xf32>
    %83 = arith.addf %0, %82 : vector<8x128xf32>
    %c0_21 = arith.constant 0 : index
    %c0_22 = arith.constant 0 : index
    %84 = vector.load %arg5[%c0_21, %c0_22] : memref<8x128xf32, #tpu.memory_space<vmem>>, vector<8x128xf32>
    tpu.vector_store %arg5[%c0_21, %c0_22], %83 {strides = array<i32>} : memref<8x128xf32, #tpu.memory_space<vmem>>, vector<8x128xf32>,
    return
  }
  func.func @transform_0(%arg0: i32) -> (i32, i32) {
    %c0_i32 = arith.constant 0 : i32
    %c0_i32_0 = arith.constant 0 : i32
    return %arg0, %c0_i32 : i32, i32
  }
  func.func @transform_1(%arg0: i32) -> (i32, i32) {
    %c0_i32 = arith.constant 0 : i32
    %c0_i32_0 = arith.constant 0 : i32
    %c0_i32_1 = arith.constant 0 : i32
    return %c0_i32, %c0_i32_0 : i32, i32
  }
  func.func @transform_2(%arg0: i32) -> (i32, i32) {
    %c0_i32 = arith.constant 0 : i32
    %c0_i32_0 = arith.constant 0 : i32
    %c0_i32_1 = arith.constant 0 : i32
    return %c0_i32, %c0_i32_0 : i32, i32
  }
  func.func @transform_3(%arg0: i32) -> (i32, i32) {
    %c0_i32 = arith.constant 0 : i32
    %c0_i32_0 = arith.constant 0 : i32
    %c0_i32_1 = arith.constant 0 : i32
    return %c0_i32, %c0_i32_0 : i32, i32
  }
  func.func @transform_4(%arg0: i32) -> (i32, i32) {
    %c0_i32 = arith.constant 0 : i32
    %c0_i32_0 = arith.constant 0 : i32
    return %arg0, %c0_i32 : i32, i32
  }
}

module attributes {stable_mosaic.version = 11 : i64} {
  func.func @_attn_block_kernel(%arg0: i32, %arg1: memref<1x8x128xf32, #tpu.memory_space<vmem>>, %arg2: memref<1x128xf32, #tpu.memory_space<vmem>>, %arg3: memref<128x192xbf16, #tpu.memory_space<vmem>>, %arg4: memref<128x128xbf16, #tpu.memory_space<vmem>>, %arg5: memref<1x8x128xf32, #tpu.memory_space<vmem>>) attributes {dimension_semantics = [#tpu.dimension_semantics<parallel>], iteration_bounds = array<i64: 2>, scalar_prefetch = 0 : i64, scratch_operands = 0 : i64, tpu.core_type = #tpu.core_type<tc>, window_params = [{transform_indices = @transform_0, window_bounds = array<i64: 1, 8, 128>}, {pipeline_mode = #tpu.pipeline_mode<synchronous>, transform_indices = @transform_1, window_bounds = array<i64: 1, 128>}, {pipeline_mode = #tpu.pipeline_mode<synchronous>, transform_indices = @transform_2, window_bounds = array<i64: 128, 192>}, {pipeline_mode = #tpu.pipeline_mode<synchronous>, transform_indices = @transform_3, window_bounds = array<i64: 128, 128>}, {transform_indices = @transform_4, window_bounds = array<i64: 1, 8, 128>}]} {
    %c0 = arith.constant 0 : index
    %c0_0 = arith.constant 0 : index
    %c0_1 = arith.constant 0 : index
    %0 = vector.load %arg1[%c0, %c0_0, %c0_1] : memref<1x8x128xf32, #tpu.memory_space<vmem>>, vector<1x8x128xf32>
    %1 = vector.shape_cast %0 : vector<1x8x128xf32> to vector<8x128xf32>
    %2 = arith.mulf %1, %1 : vector<8x128xf32>
    %cst = arith.constant dense<0.000000e+00> : vector<8xf32>
    %3 = vector.multi_reduction <add>, %2, %cst [1] : vector<8x128xf32> to vector<8xf32>
    %4 = vector.shape_cast %3 : vector<8xf32> to vector<8x1xf32>
    %cst_2 = arith.constant 1.280000e+02 : f32
    %5 = vector.broadcast %cst_2 : f32 to vector<8x1xf32>
    %6 = arith.divf %4, %5 : vector<8x1xf32>
    %cst_3 = arith.constant 9.99999997E-7 : f32
    %7 = vector.broadcast %cst_3 : f32 to vector<8x1xf32>
    %8 = arith.addf %6, %7 : vector<8x1xf32>
    %9 = math.rsqrt %8 : vector<8x1xf32>
    %10 = vector.broadcast %9 : vector<8x1xf32> to vector<8x128xf32>
    %11 = arith.mulf %1, %10 : vector<8x128xf32>
    %c0_4 = arith.constant 0 : index
    %c0_5 = arith.constant 0 : index
    %12 = vector.load %arg2[%c0_4, %c0_5] : memref<1x128xf32, #tpu.memory_space<vmem>>, vector<1x128xf32>
    %13 = vector.broadcast %12 : vector<1x128xf32> to vector<8x128xf32>
    %14 = arith.mulf %11, %13 : vector<8x128xf32>
    %15 = arith.truncf %14 : vector<8x128xf32> to vector<8x128xbf16>
    %c0_6 = arith.constant 0 : index
    %c0_7 = arith.constant 0 : index
    %16 = vector.load %arg3[%c0_6, %c0_7] : memref<128x192xbf16, #tpu.memory_space<vmem>>, vector<128x192xbf16>
    %cst_8 = arith.constant dense<0.000000e+00> : vector<8x192xf32>
    %17 = tpu.matmul %15, %16, %cst_8 {dimension_numbers = #tpu.dot_dimension_numbers<[1], [0], [0], [1], [0, 0, 1, 1], [], []>} : vector<8x128xbf16>, vector<128x192xbf16>, vector<8x192xf32> -> vector<8x192xf32>
    %18 = vector.extract_strided_slice %17 {offsets = [0, 0], sizes = [8, 128], strides = [1, 1]} : vector<8x192xf32> to vector<8x128xf32>
    %19 = vector.extract_strided_slice %17 {offsets = [0, 128], sizes = [8, 32], strides = [1, 1]} : vector<8x192xf32> to vector<8x32xf32>
    %20 = vector.extract_strided_slice %17 {offsets = [0, 160], sizes = [8, 32], strides = [1, 1]} : vector<8x192xf32> to vector<8x32xf32>
    %21 = tpu.iota {dimensions = array<i32: 0>} : vector<32x8xi32>
    %c8_i32 = arith.constant 8 : i32
    %c0_i32 = arith.constant 0 : i32
    %22 = arith.cmpi eq, %c8_i32, %c0_i32 : i32
    %c1_i32 = arith.constant 1 : i32
    %23 = arith.select %22, %c1_i32, %c8_i32 : i32
    %24 = vector.broadcast %23 : i32 to vector<32x8xi32>
    %25 = arith.remsi %21, %24 : vector<32x8xi32>
    %c0_i32_9 = arith.constant 0 : i32
    %26 = vector.broadcast %c0_i32_9 : i32 to vector<32x8xi32>
    %27 = arith.cmpi ne, %25, %26 : vector<32x8xi32>
    %c0_i32_10 = arith.constant 0 : i32
    %28 = vector.broadcast %c0_i32_10 : i32 to vector<32x8xi32>
    %29 = arith.cmpi slt, %25, %28 : vector<32x8xi32>
    %c0_i32_11 = arith.constant 0 : i32
    %30 = arith.cmpi slt, %23, %c0_i32_11 : i32
    %31 = vector.broadcast %30 : i1 to vector<32x8xi1>
    %32 = vector.broadcast %31 : vector<32x8xi1> to vector<32x8xi1>
    %33 = arith.xori %29, %32 : vector<32x8xi1>
    %34 = arith.andi %33, %27 : vector<32x8xi1>
    %35 = vector.broadcast %23 : i32 to vector<32x8xi32>
    %36 = arith.addi %25, %35 : vector<32x8xi32>
    %37 = arith.select %34, %36, %25 : vector<32x8xi1>, vector<32x8xi32>
    %38 = tpu.iota {dimensions = array<i32: 1>} : vector<32x8xi32>
    %39 = arith.cmpi sge, %37, %38 : vector<32x8xi32>
    %cst_12 = arith.constant 0.000000e+00 : f32
    %cst_13 = arith.constant -1.000000e+30 : f32
    %40 = vector.broadcast %cst_12 : f32 to vector<32x8xf32>
    %41 = vector.broadcast %cst_13 : f32 to vector<32x8xf32>
    %42 = arith.select %39, %40, %41 : vector<32x8xi1>, vector<32x8xf32>
    %43 = vector.extract_strided_slice %18 {offsets = [0, 0], sizes = [8, 16], strides = [1, 1]} : vector<8x128xf32> to vector<8x16xf32>
    %44 = vector.extract_strided_slice %18 {offsets = [0, 16], sizes = [8, 16], strides = [1, 1]} : vector<8x128xf32> to vector<8x16xf32>
    %45 = vector.extract_strided_slice %18 {offsets = [0, 32], sizes = [8, 16], strides = [1, 1]} : vector<8x128xf32> to vector<8x16xf32>
    %46 = vector.extract_strided_slice %18 {offsets = [0, 48], sizes = [8, 16], strides = [1, 1]} : vector<8x128xf32> to vector<8x16xf32>
    %47 = tpu.concatenate %43, %44, %45, %46 in 0 : vector<8x16xf32>, vector<8x16xf32>, vector<8x16xf32>, vector<8x16xf32> -> vector<32x16xf32>
    %48 = vector.extract_strided_slice %19 {offsets = [0, 0], sizes = [8, 16], strides = [1, 1]} : vector<8x32xf32> to vector<8x16xf32>
    %49 = vector.extract_strided_slice %20 {offsets = [0, 0], sizes = [8, 16], strides = [1, 1]} : vector<8x32xf32> to vector<8x16xf32>
    %50 = arith.truncf %47 : vector<32x16xf32> to vector<32x16xbf16>
    %51 = arith.truncf %48 : vector<8x16xf32> to vector<8x16xbf16>
    %cst_14 = arith.constant dense<0.000000e+00> : vector<32x8xf32>
    %52 = tpu.matmul %50, %51, %cst_14 {dimension_numbers = #tpu.dot_dimension_numbers<[1], [1], [0], [0], [0, 0, 1, 0], [], []>} : vector<32x16xbf16>, vector<8x16xbf16>, vector<32x8xf32> -> vector<32x8xf32>
    %cst_15 = arith.constant 2.500000e-01 : f32
    %53 = vector.broadcast %cst_15 : f32 to vector<32x8xf32>
    %54 = arith.mulf %52, %53 : vector<32x8xf32>
    %55 = arith.addf %54, %42 : vector<32x8xf32>
    %cst_16 = arith.constant dense<0xFF800000> : vector<32xf32>
    %56 = vector.multi_reduction <maximumf>, %55, %cst_16 [1] : vector<32x8xf32> to vector<32xf32>
    %57 = vector.shape_cast %56 : vector<32xf32> to vector<32x1xf32>
    %58 = vector.broadcast %57 : vector<32x1xf32> to vector<32x8xf32>
    %59 = arith.subf %55, %58 : vector<32x8xf32>
    %60 = math.exp %59 : vector<32x8xf32>
    %cst_17 = arith.constant dense<0.000000e+00> : vector<32xf32>
    %61 = vector.multi_reduction <add>, %60, %cst_17 [1] : vector<32x8xf32> to vector<32xf32>
    %62 = vector.shape_cast %61 : vector<32xf32> to vector<32x1xf32>
    %63 = tpu.reciprocal %62 {approx = true} : vector<32x1xf32> -> vector<32x1xf32>
    %64 = vector.broadcast %63 : vector<32x1xf32> to vector<32x8xf32>
    %65 = arith.mulf %60, %64 : vector<32x8xf32>
    %66 = arith.truncf %65 : vector<32x8xf32> to vector<32x8xbf16>
    %67 = arith.truncf %49 : vector<8x16xf32> to vector<8x16xbf16>
    %cst_18 = arith.constant dense<0.000000e+00> : vector<32x16xf32>
    %68 = tpu.matmul %66, %67, %cst_18 {dimension_numbers = #tpu.dot_dimension_numbers<[1], [0], [0], [1], [0, 0, 1, 1], [], []>} : vector<32x8xbf16>, vector<8x16xbf16>, vector<32x16xf32> -> vector<32x16xf32>
    %69 = vector.extract_strided_slice %68 {offsets = [0, 0], sizes = [8, 16], strides = [1, 1]} : vector<32x16xf32> to vector<8x16xf32>
    %70 = vector.extract_strided_slice %68 {offsets = [8, 0], sizes = [8, 16], strides = [1, 1]} : vector<32x16xf32> to vector<8x16xf32>
    %71 = vector.extract_strided_slice %68 {offsets = [16, 0], sizes = [8, 16], strides = [1, 1]} : vector<32x16xf32> to vector<8x16xf32>
    %72 = vector.extract_strided_slice %68 {offsets = [24, 0], sizes = [8, 16], strides = [1, 1]} : vector<32x16xf32> to vector<8x16xf32>
    %73 = vector.extract_strided_slice %18 {offsets = [0, 64], sizes = [8, 16], strides = [1, 1]} : vector<8x128xf32> to vector<8x16xf32>
    %74 = vector.extract_strided_slice %18 {offsets = [0, 80], sizes = [8, 16], strides = [1, 1]} : vector<8x128xf32> to vector<8x16xf32>
    %75 = vector.extract_strided_slice %18 {offsets = [0, 96], sizes = [8, 16], strides = [1, 1]} : vector<8x128xf32> to vector<8x16xf32>
    %76 = vector.extract_strided_slice %18 {offsets = [0, 112], sizes = [8, 16], strides = [1, 1]} : vector<8x128xf32> to vector<8x16xf32>
    %77 = tpu.concatenate %73, %74, %75, %76 in 0 : vector<8x16xf32>, vector<8x16xf32>, vector<8x16xf32>, vector<8x16xf32> -> vector<32x16xf32>
    %78 = vector.extract_strided_slice %19 {offsets = [0, 16], sizes = [8, 16], strides = [1, 1]} : vector<8x32xf32> to vector<8x16xf32>
    %79 = vector.extract_strided_slice %20 {offsets = [0, 16], sizes = [8, 16], strides = [1, 1]} : vector<8x32xf32> to vector<8x16xf32>
    %80 = arith.truncf %77 : vector<32x16xf32> to vector<32x16xbf16>
    %81 = arith.truncf %78 : vector<8x16xf32> to vector<8x16xbf16>
    %cst_19 = arith.constant dense<0.000000e+00> : vector<32x8xf32>
    %82 = tpu.matmul %80, %81, %cst_19 {dimension_numbers = #tpu.dot_dimension_numbers<[1], [1], [0], [0], [0, 0, 1, 0], [], []>} : vector<32x16xbf16>, vector<8x16xbf16>, vector<32x8xf32> -> vector<32x8xf32>
    %cst_20 = arith.constant 2.500000e-01 : f32
    %83 = vector.broadcast %cst_20 : f32 to vector<32x8xf32>
    %84 = arith.mulf %82, %83 : vector<32x8xf32>
    %85 = arith.addf %84, %42 : vector<32x8xf32>
    %cst_21 = arith.constant dense<0xFF800000> : vector<32xf32>
    %86 = vector.multi_reduction <maximumf>, %85, %cst_21 [1] : vector<32x8xf32> to vector<32xf32>
    %87 = vector.shape_cast %86 : vector<32xf32> to vector<32x1xf32>
    %88 = vector.broadcast %87 : vector<32x1xf32> to vector<32x8xf32>
    %89 = arith.subf %85, %88 : vector<32x8xf32>
    %90 = math.exp %89 : vector<32x8xf32>
    %cst_22 = arith.constant dense<0.000000e+00> : vector<32xf32>
    %91 = vector.multi_reduction <add>, %90, %cst_22 [1] : vector<32x8xf32> to vector<32xf32>
    %92 = vector.shape_cast %91 : vector<32xf32> to vector<32x1xf32>
    %93 = tpu.reciprocal %92 {approx = true} : vector<32x1xf32> -> vector<32x1xf32>
    %94 = vector.broadcast %93 : vector<32x1xf32> to vector<32x8xf32>
    %95 = arith.mulf %90, %94 : vector<32x8xf32>
    %96 = arith.truncf %95 : vector<32x8xf32> to vector<32x8xbf16>
    %97 = arith.truncf %79 : vector<8x16xf32> to vector<8x16xbf16>
    %cst_23 = arith.constant dense<0.000000e+00> : vector<32x16xf32>
    %98 = tpu.matmul %96, %97, %cst_23 {dimension_numbers = #tpu.dot_dimension_numbers<[1], [0], [0], [1], [0, 0, 1, 1], [], []>} : vector<32x8xbf16>, vector<8x16xbf16>, vector<32x16xf32> -> vector<32x16xf32>
    %99 = vector.extract_strided_slice %98 {offsets = [0, 0], sizes = [8, 16], strides = [1, 1]} : vector<32x16xf32> to vector<8x16xf32>
    %100 = vector.extract_strided_slice %98 {offsets = [8, 0], sizes = [8, 16], strides = [1, 1]} : vector<32x16xf32> to vector<8x16xf32>
    %101 = vector.extract_strided_slice %98 {offsets = [16, 0], sizes = [8, 16], strides = [1, 1]} : vector<32x16xf32> to vector<8x16xf32>
    %102 = vector.extract_strided_slice %98 {offsets = [24, 0], sizes = [8, 16], strides = [1, 1]} : vector<32x16xf32> to vector<8x16xf32>
    %103 = tpu.concatenate %69, %70, %71, %72, %99, %100, %101, %102 in 1 : vector<8x16xf32>, vector<8x16xf32>, vector<8x16xf32>, vector<8x16xf32>, vector<8x16xf32>, vector<8x16xf32>, vector<8x16xf32>, vector<8x16xf32> -> vector<8x128xf32>
    %104 = arith.truncf %103 : vector<8x128xf32> to vector<8x128xbf16>
    %c0_24 = arith.constant 0 : index
    %c0_25 = arith.constant 0 : index
    %105 = vector.load %arg4[%c0_24, %c0_25] : memref<128x128xbf16, #tpu.memory_space<vmem>>, vector<128x128xbf16>
    %cst_26 = arith.constant dense<0.000000e+00> : vector<8x128xf32>
    %106 = tpu.matmul %104, %105, %cst_26 {dimension_numbers = #tpu.dot_dimension_numbers<[1], [0], [0], [1], [0, 0, 1, 1], [], []>} : vector<8x128xbf16>, vector<128x128xbf16>, vector<8x128xf32> -> vector<8x128xf32>
    %107 = arith.addf %1, %106 : vector<8x128xf32>
    %c0_27 = arith.constant 0 : index
    %c0_28 = arith.constant 0 : index
    %c0_29 = arith.constant 0 : index
    %108 = vector.load %arg5[%c0_27, %c0_28, %c0_29] : memref<1x8x128xf32, #tpu.memory_space<vmem>>, vector<1x8x128xf32>
    %109 = vector.shape_cast %108 : vector<1x8x128xf32> to vector<8x128xf32>
    %110 = vector.shape_cast %107 : vector<8x128xf32> to vector<1x8x128xf32>
    tpu.vector_store %arg5[%c0_27, %c0_28, %c0_29], %110 {strides = array<i32>} : memref<1x8x128xf32, #tpu.memory_space<vmem>>, vector<1x8x128xf32>,
    return
  }
  func.func @transform_0(%arg0: i32) -> (i32, i32, i32) {
    %c0_i32 = arith.constant 0 : i32
    %c0_i32_0 = arith.constant 0 : i32
    %c0_i32_1 = arith.constant 0 : i32
    return %arg0, %c0_i32, %c0_i32_0 : i32, i32, i32
  }
  func.func @transform_1(%arg0: i32) -> (i32, i32) {
    %c0_i32 = arith.constant 0 : i32
    %c0_i32_0 = arith.constant 0 : i32
    %c0_i32_1 = arith.constant 0 : i32
    return %c0_i32, %c0_i32_0 : i32, i32
  }
  func.func @transform_2(%arg0: i32) -> (i32, i32) {
    %c0_i32 = arith.constant 0 : i32
    %c0_i32_0 = arith.constant 0 : i32
    %c0_i32_1 = arith.constant 0 : i32
    return %c0_i32, %c0_i32_0 : i32, i32
  }
  func.func @transform_3(%arg0: i32) -> (i32, i32) {
    %c0_i32 = arith.constant 0 : i32
    %c0_i32_0 = arith.constant 0 : i32
    %c0_i32_1 = arith.constant 0 : i32
    return %c0_i32, %c0_i32_0 : i32, i32
  }
  func.func @transform_4(%arg0: i32) -> (i32, i32, i32) {
    %c0_i32 = arith.constant 0 : i32
    %c0_i32_0 = arith.constant 0 : i32
    %c0_i32_1 = arith.constant 0 : i32
    return %arg0, %c0_i32, %c0_i32_0 : i32, i32, i32
  }
}

module attributes {stable_mosaic.version = 11 : i64} {
  func.func @_attn_block_kernel(%arg0: i32, %arg1: memref<1x8x128xf32, #tpu.memory_space<vmem>>, %arg2: memref<1x128xf32, #tpu.memory_space<vmem>>, %arg3: memref<128x192xbf16, #tpu.memory_space<vmem>>, %arg4: memref<128x128xbf16, #tpu.memory_space<vmem>>, %arg5: memref<1x8x128xf32, #tpu.memory_space<vmem>>) attributes {dimension_semantics = [#tpu.dimension_semantics<parallel>], iteration_bounds = array<i64: 2>, scalar_prefetch = 0 : i64, scratch_operands = 0 : i64, tpu.core_type = #tpu.core_type<tc>, window_params = [{transform_indices = @transform_0, window_bounds = array<i64: 1, 8, 128>}, {pipeline_mode = #tpu.pipeline_mode<synchronous>, transform_indices = @transform_1, window_bounds = array<i64: 1, 128>}, {pipeline_mode = #tpu.pipeline_mode<synchronous>, transform_indices = @transform_2, window_bounds = array<i64: 128, 192>}, {pipeline_mode = #tpu.pipeline_mode<synchronous>, transform_indices = @transform_3, window_bounds = array<i64: 128, 128>}, {transform_indices = @transform_4, window_bounds = array<i64: 1, 8, 128>}]} {
    %c0 = arith.constant 0 : index
    %c0_0 = arith.constant 0 : index
    %c0_1 = arith.constant 0 : index
    %0 = vector.load %arg1[%c0, %c0_0, %c0_1] : memref<1x8x128xf32, #tpu.memory_space<vmem>>, vector<1x8x128xf32>
    %1 = vector.shape_cast %0 : vector<1x8x128xf32> to vector<8x128xf32>
    %2 = arith.mulf %1, %1 : vector<8x128xf32>
    %cst = arith.constant dense<0.000000e+00> : vector<8xf32>
    %3 = vector.multi_reduction <add>, %2, %cst [1] : vector<8x128xf32> to vector<8xf32>
    %4 = vector.shape_cast %3 : vector<8xf32> to vector<8x1xf32>
    %cst_2 = arith.constant 1.280000e+02 : f32
    %5 = vector.broadcast %cst_2 : f32 to vector<8x1xf32>
    %6 = arith.divf %4, %5 : vector<8x1xf32>
    %cst_3 = arith.constant 9.99999997E-7 : f32
    %7 = vector.broadcast %cst_3 : f32 to vector<8x1xf32>
    %8 = arith.addf %6, %7 : vector<8x1xf32>
    %9 = math.rsqrt %8 : vector<8x1xf32>
    %10 = vector.broadcast %9 : vector<8x1xf32> to vector<8x128xf32>
    %11 = arith.mulf %1, %10 : vector<8x128xf32>
    %c0_4 = arith.constant 0 : index
    %c0_5 = arith.constant 0 : index
    %12 = vector.load %arg2[%c0_4, %c0_5] : memref<1x128xf32, #tpu.memory_space<vmem>>, vector<1x128xf32>
    %13 = vector.broadcast %12 : vector<1x128xf32> to vector<8x128xf32>
    %14 = arith.mulf %11, %13 : vector<8x128xf32>
    %15 = arith.truncf %14 : vector<8x128xf32> to vector<8x128xbf16>
    %c0_6 = arith.constant 0 : index
    %c0_7 = arith.constant 0 : index
    %16 = vector.load %arg3[%c0_6, %c0_7] : memref<128x192xbf16, #tpu.memory_space<vmem>>, vector<128x192xbf16>
    %cst_8 = arith.constant dense<0.000000e+00> : vector<8x192xf32>
    %17 = tpu.matmul %15, %16, %cst_8 {dimension_numbers = #tpu.dot_dimension_numbers<[1], [0], [0], [1], [0, 0, 1, 1], [], []>} : vector<8x128xbf16>, vector<128x192xbf16>, vector<8x192xf32> -> vector<8x192xf32>
    %18 = vector.extract_strided_slice %17 {offsets = [0, 0], sizes = [8, 128], strides = [1, 1]} : vector<8x192xf32> to vector<8x128xf32>
    %19 = vector.extract_strided_slice %17 {offsets = [0, 128], sizes = [8, 32], strides = [1, 1]} : vector<8x192xf32> to vector<8x32xf32>
    %20 = vector.extract_strided_slice %17 {offsets = [0, 160], sizes = [8, 32], strides = [1, 1]} : vector<8x192xf32> to vector<8x32xf32>
    %21 = tpu.iota {dimensions = array<i32: 0>} : vector<32x8xi32>
    %c8_i32 = arith.constant 8 : i32
    %c0_i32 = arith.constant 0 : i32
    %22 = arith.cmpi eq, %c8_i32, %c0_i32 : i32
    %c1_i32 = arith.constant 1 : i32
    %23 = arith.select %22, %c1_i32, %c8_i32 : i32
    %24 = vector.broadcast %23 : i32 to vector<32x8xi32>
    %25 = arith.remsi %21, %24 : vector<32x8xi32>
    %c0_i32_9 = arith.constant 0 : i32
    %26 = vector.broadcast %c0_i32_9 : i32 to vector<32x8xi32>
    %27 = arith.cmpi ne, %25, %26 : vector<32x8xi32>
    %c0_i32_10 = arith.constant 0 : i32
    %28 = vector.broadcast %c0_i32_10 : i32 to vector<32x8xi32>
    %29 = arith.cmpi slt, %25, %28 : vector<32x8xi32>
    %c0_i32_11 = arith.constant 0 : i32
    %30 = arith.cmpi slt, %23, %c0_i32_11 : i32
    %31 = vector.broadcast %30 : i1 to vector<32x8xi1>
    %32 = vector.broadcast %31 : vector<32x8xi1> to vector<32x8xi1>
    %33 = arith.xori %29, %32 : vector<32x8xi1>
    %34 = arith.andi %33, %27 : vector<32x8xi1>
    %35 = vector.broadcast %23 : i32 to vector<32x8xi32>
    %36 = arith.addi %25, %35 : vector<32x8xi32>
    %37 = arith.select %34, %36, %25 : vector<32x8xi1>, vector<32x8xi32>
    %38 = tpu.iota {dimensions = array<i32: 1>} : vector<32x8xi32>
    %39 = arith.cmpi sge, %37, %38 : vector<32x8xi32>
    %cst_12 = arith.constant 0.000000e+00 : f32
    %cst_13 = arith.constant -1.000000e+30 : f32
    %40 = vector.broadcast %cst_12 : f32 to vector<32x8xf32>
    %41 = vector.broadcast %cst_13 : f32 to vector<32x8xf32>
    %42 = arith.select %39, %40, %41 : vector<32x8xi1>, vector<32x8xf32>
    %43 = vector.extract_strided_slice %18 {offsets = [0, 0], sizes = [8, 16], strides = [1, 1]} : vector<8x128xf32> to vector<8x16xf32>
    %44 = vector.extract_strided_slice %18 {offsets = [0, 16], sizes = [8, 16], strides = [1, 1]} : vector<8x128xf32> to vector<8x16xf32>
    %45 = vector.extract_strided_slice %18 {offsets = [0, 32], sizes = [8, 16], strides = [1, 1]} : vector<8x128xf32> to vector<8x16xf32>
    %46 = vector.extract_strided_slice %18 {offsets = [0, 48], sizes = [8, 16], strides = [1, 1]} : vector<8x128xf32> to vector<8x16xf32>
    %47 = tpu.concatenate %43, %44, %45, %46 in 0 : vector<8x16xf32>, vector<8x16xf32>, vector<8x16xf32>, vector<8x16xf32> -> vector<32x16xf32>
    %48 = vector.extract_strided_slice %19 {offsets = [0, 0], sizes = [8, 16], strides = [1, 1]} : vector<8x32xf32> to vector<8x16xf32>
    %49 = vector.extract_strided_slice %20 {offsets = [0, 0], sizes = [8, 16], strides = [1, 1]} : vector<8x32xf32> to vector<8x16xf32>
    %50 = arith.truncf %47 : vector<32x16xf32> to vector<32x16xbf16>
    %51 = arith.truncf %48 : vector<8x16xf32> to vector<8x16xbf16>
    %cst_14 = arith.constant dense<0.000000e+00> : vector<32x8xf32>
    %52 = tpu.matmul %50, %51, %cst_14 {dimension_numbers = #tpu.dot_dimension_numbers<[1], [1], [0], [0], [0, 0, 1, 0], [], []>} : vector<32x16xbf16>, vector<8x16xbf16>, vector<32x8xf32> -> vector<32x8xf32>
    %cst_15 = arith.constant 2.500000e-01 : f32
    %53 = vector.broadcast %cst_15 : f32 to vector<32x8xf32>
    %54 = arith.mulf %52, %53 : vector<32x8xf32>
    %55 = arith.addf %54, %42 : vector<32x8xf32>
    %cst_16 = arith.constant dense<0xFF800000> : vector<32xf32>
    %56 = vector.multi_reduction <maximumf>, %55, %cst_16 [1] : vector<32x8xf32> to vector<32xf32>
    %57 = vector.shape_cast %56 : vector<32xf32> to vector<32x1xf32>
    %58 = vector.broadcast %57 : vector<32x1xf32> to vector<32x8xf32>
    %59 = arith.subf %55, %58 : vector<32x8xf32>
    %60 = math.exp %59 : vector<32x8xf32>
    %cst_17 = arith.constant dense<0.000000e+00> : vector<32xf32>
    %61 = vector.multi_reduction <add>, %60, %cst_17 [1] : vector<32x8xf32> to vector<32xf32>
    %62 = vector.shape_cast %61 : vector<32xf32> to vector<32x1xf32>
    %63 = tpu.reciprocal %62 {approx = true} : vector<32x1xf32> -> vector<32x1xf32>
    %64 = vector.broadcast %63 : vector<32x1xf32> to vector<32x8xf32>
    %65 = arith.mulf %60, %64 : vector<32x8xf32>
    %66 = arith.truncf %65 : vector<32x8xf32> to vector<32x8xbf16>
    %67 = arith.truncf %49 : vector<8x16xf32> to vector<8x16xbf16>
    %cst_18 = arith.constant dense<0.000000e+00> : vector<32x16xf32>
    %68 = tpu.matmul %66, %67, %cst_18 {dimension_numbers = #tpu.dot_dimension_numbers<[1], [0], [0], [1], [0, 0, 1, 1], [], []>} : vector<32x8xbf16>, vector<8x16xbf16>, vector<32x16xf32> -> vector<32x16xf32>
    %69 = vector.extract_strided_slice %68 {offsets = [0, 0], sizes = [8, 16], strides = [1, 1]} : vector<32x16xf32> to vector<8x16xf32>
    %70 = vector.extract_strided_slice %68 {offsets = [8, 0], sizes = [8, 16], strides = [1, 1]} : vector<32x16xf32> to vector<8x16xf32>
    %71 = vector.extract_strided_slice %68 {offsets = [16, 0], sizes = [8, 16], strides = [1, 1]} : vector<32x16xf32> to vector<8x16xf32>
    %72 = vector.extract_strided_slice %68 {offsets = [24, 0], sizes = [8, 16], strides = [1, 1]} : vector<32x16xf32> to vector<8x16xf32>
    %73 = vector.extract_strided_slice %18 {offsets = [0, 64], sizes = [8, 16], strides = [1, 1]} : vector<8x128xf32> to vector<8x16xf32>
    %74 = vector.extract_strided_slice %18 {offsets = [0, 80], sizes = [8, 16], strides = [1, 1]} : vector<8x128xf32> to vector<8x16xf32>
    %75 = vector.extract_strided_slice %18 {offsets = [0, 96], sizes = [8, 16], strides = [1, 1]} : vector<8x128xf32> to vector<8x16xf32>
    %76 = vector.extract_strided_slice %18 {offsets = [0, 112], sizes = [8, 16], strides = [1, 1]} : vector<8x128xf32> to vector<8x16xf32>
    %77 = tpu.concatenate %73, %74, %75, %76 in 0 : vector<8x16xf32>, vector<8x16xf32>, vector<8x16xf32>, vector<8x16xf32> -> vector<32x16xf32>
    %78 = vector.extract_strided_slice %19 {offsets = [0, 16], sizes = [8, 16], strides = [1, 1]} : vector<8x32xf32> to vector<8x16xf32>
    %79 = vector.extract_strided_slice %20 {offsets = [0, 16], sizes = [8, 16], strides = [1, 1]} : vector<8x32xf32> to vector<8x16xf32>
    %80 = arith.truncf %77 : vector<32x16xf32> to vector<32x16xbf16>
    %81 = arith.truncf %78 : vector<8x16xf32> to vector<8x16xbf16>
    %cst_19 = arith.constant dense<0.000000e+00> : vector<32x8xf32>
    %82 = tpu.matmul %80, %81, %cst_19 {dimension_numbers = #tpu.dot_dimension_numbers<[1], [1], [0], [0], [0, 0, 1, 0], [], []>} : vector<32x16xbf16>, vector<8x16xbf16>, vector<32x8xf32> -> vector<32x8xf32>
    %cst_20 = arith.constant 2.500000e-01 : f32
    %83 = vector.broadcast %cst_20 : f32 to vector<32x8xf32>
    %84 = arith.mulf %82, %83 : vector<32x8xf32>
    %85 = arith.addf %84, %42 : vector<32x8xf32>
    %cst_21 = arith.constant dense<0xFF800000> : vector<32xf32>
    %86 = vector.multi_reduction <maximumf>, %85, %cst_21 [1] : vector<32x8xf32> to vector<32xf32>
    %87 = vector.shape_cast %86 : vector<32xf32> to vector<32x1xf32>
    %88 = vector.broadcast %87 : vector<32x1xf32> to vector<32x8xf32>
    %89 = arith.subf %85, %88 : vector<32x8xf32>
    %90 = math.exp %89 : vector<32x8xf32>
    %cst_22 = arith.constant dense<0.000000e+00> : vector<32xf32>
    %91 = vector.multi_reduction <add>, %90, %cst_22 [1] : vector<32x8xf32> to vector<32xf32>
    %92 = vector.shape_cast %91 : vector<32xf32> to vector<32x1xf32>
    %93 = tpu.reciprocal %92 {approx = true} : vector<32x1xf32> -> vector<32x1xf32>
    %94 = vector.broadcast %93 : vector<32x1xf32> to vector<32x8xf32>
    %95 = arith.mulf %90, %94 : vector<32x8xf32>
    %96 = arith.truncf %95 : vector<32x8xf32> to vector<32x8xbf16>
    %97 = arith.truncf %79 : vector<8x16xf32> to vector<8x16xbf16>
    %cst_23 = arith.constant dense<0.000000e+00> : vector<32x16xf32>
    %98 = tpu.matmul %96, %97, %cst_23 {dimension_numbers = #tpu.dot_dimension_numbers<[1], [0], [0], [1], [0, 0, 1, 1], [], []>} : vector<32x8xbf16>, vector<8x16xbf16>, vector<32x16xf32> -> vector<32x16xf32>
    %99 = vector.extract_strided_slice %98 {offsets = [0, 0], sizes = [8, 16], strides = [1, 1]} : vector<32x16xf32> to vector<8x16xf32>
    %100 = vector.extract_strided_slice %98 {offsets = [8, 0], sizes = [8, 16], strides = [1, 1]} : vector<32x16xf32> to vector<8x16xf32>
    %101 = vector.extract_strided_slice %98 {offsets = [16, 0], sizes = [8, 16], strides = [1, 1]} : vector<32x16xf32> to vector<8x16xf32>
    %102 = vector.extract_strided_slice %98 {offsets = [24, 0], sizes = [8, 16], strides = [1, 1]} : vector<32x16xf32> to vector<8x16xf32>
    %103 = tpu.concatenate %69, %70, %71, %72, %99, %100, %101, %102 in 1 : vector<8x16xf32>, vector<8x16xf32>, vector<8x16xf32>, vector<8x16xf32>, vector<8x16xf32>, vector<8x16xf32>, vector<8x16xf32>, vector<8x16xf32> -> vector<8x128xf32>
    %104 = arith.truncf %103 : vector<8x128xf32> to vector<8x128xbf16>
    %c0_24 = arith.constant 0 : index
    %c0_25 = arith.constant 0 : index
    %105 = vector.load %arg4[%c0_24, %c0_25] : memref<128x128xbf16, #tpu.memory_space<vmem>>, vector<128x128xbf16>
    %cst_26 = arith.constant dense<0.000000e+00> : vector<8x128xf32>
    %106 = tpu.matmul %104, %105, %cst_26 {dimension_numbers = #tpu.dot_dimension_numbers<[1], [0], [0], [1], [0, 0, 1, 1], [], []>} : vector<8x128xbf16>, vector<128x128xbf16>, vector<8x128xf32> -> vector<8x128xf32>
    %107 = arith.addf %1, %106 : vector<8x128xf32>
    %c0_27 = arith.constant 0 : index
    %c0_28 = arith.constant 0 : index
    %c0_29 = arith.constant 0 : index
    %108 = vector.load %arg5[%c0_27, %c0_28, %c0_29] : memref<1x8x128xf32, #tpu.memory_space<vmem>>, vector<1x8x128xf32>
    %109 = vector.shape_cast %108 : vector<1x8x128xf32> to vector<8x128xf32>
    %110 = vector.shape_cast %107 : vector<8x128xf32> to vector<1x8x128xf32>
    tpu.vector_store %arg5[%c0_27, %c0_28, %c0_29], %110 {strides = array<i32>} : memref<1x8x128xf32, #tpu.memory_space<vmem>>, vector<1x8x128xf32>,
    return
  }
  func.func @transform_0(%arg0: i32) -> (i32, i32, i32) {
    %c0_i32 = arith.constant 0 : i32
    %c0_i32_0 = arith.constant 0 : i32
    %c0_i32_1 = arith.constant 0 : i32
    return %arg0, %c0_i32, %c0_i32_0 : i32, i32, i32
  }
  func.func @transform_1(%arg0: i32) -> (i32, i32) {
    %c0_i32 = arith.constant 0 : i32
    %c0_i32_0 = arith.constant 0 : i32
    %c0_i32_1 = arith.constant 0 : i32
    return %c0_i32, %c0_i32_0 : i32, i32
  }
  func.func @transform_2(%arg0: i32) -> (i32, i32) {
    %c0_i32 = arith.constant 0 : i32
    %c0_i32_0 = arith.constant 0 : i32
    %c0_i32_1 = arith.constant 0 : i32
    return %c0_i32, %c0_i32_0 : i32, i32
  }
  func.func @transform_3(%arg0: i32) -> (i32, i32) {
    %c0_i32 = arith.constant 0 : i32
    %c0_i32_0 = arith.constant 0 : i32
    %c0_i32_1 = arith.constant 0 : i32
    return %c0_i32, %c0_i32_0 : i32, i32
  }
  func.func @transform_4(%arg0: i32) -> (i32, i32, i32) {
    %c0_i32 = arith.constant 0 : i32
    %c0_i32_0 = arith.constant 0 : i32
    %c0_i32_1 = arith.constant 0 : i32
    return %arg0, %c0_i32, %c0_i32_0 : i32, i32, i32
  }
}

module attributes {stable_mosaic.version = 11 : i64} {
  func.func @_head_kernel(%arg0: i32, %arg1: memref<8x128xf32, #tpu.memory_space<vmem>>, %arg2: memref<1x128xf32, #tpu.memory_space<vmem>>, %arg3: memref<128x256xbf16, #tpu.memory_space<vmem>>, %arg4: memref<8x256xf32, #tpu.memory_space<vmem>>) attributes {dimension_semantics = [#tpu.dimension_semantics<parallel>], iteration_bounds = array<i64: 2>, scalar_prefetch = 0 : i64, scratch_operands = 0 : i64, tpu.core_type = #tpu.core_type<tc>, window_params = [{transform_indices = @transform_0, window_bounds = array<i64: 8, 128>}, {pipeline_mode = #tpu.pipeline_mode<synchronous>, transform_indices = @transform_1, window_bounds = array<i64: 1, 128>}, {pipeline_mode = #tpu.pipeline_mode<synchronous>, transform_indices = @transform_2, window_bounds = array<i64: 128, 256>}, {transform_indices = @transform_3, window_bounds = array<i64: 8, 256>}]} {
    %c0 = arith.constant 0 : index
    %c0_0 = arith.constant 0 : index
    %0 = vector.load %arg1[%c0, %c0_0] : memref<8x128xf32, #tpu.memory_space<vmem>>, vector<8x128xf32>
    %1 = arith.mulf %0, %0 : vector<8x128xf32>
    %cst = arith.constant dense<0.000000e+00> : vector<8xf32>
    %2 = vector.multi_reduction <add>, %1, %cst [1] : vector<8x128xf32> to vector<8xf32>
    %3 = vector.shape_cast %2 : vector<8xf32> to vector<8x1xf32>
    %cst_1 = arith.constant 1.280000e+02 : f32
    %4 = vector.broadcast %cst_1 : f32 to vector<8x1xf32>
    %5 = arith.divf %3, %4 : vector<8x1xf32>
    %cst_2 = arith.constant 9.99999997E-7 : f32
    %6 = vector.broadcast %cst_2 : f32 to vector<8x1xf32>
    %7 = arith.addf %5, %6 : vector<8x1xf32>
    %8 = math.rsqrt %7 : vector<8x1xf32>
    %9 = vector.broadcast %8 : vector<8x1xf32> to vector<8x128xf32>
    %10 = arith.mulf %0, %9 : vector<8x128xf32>
    %c0_3 = arith.constant 0 : index
    %c0_4 = arith.constant 0 : index
    %11 = vector.load %arg2[%c0_3, %c0_4] : memref<1x128xf32, #tpu.memory_space<vmem>>, vector<1x128xf32>
    %12 = vector.broadcast %11 : vector<1x128xf32> to vector<8x128xf32>
    %13 = arith.mulf %10, %12 : vector<8x128xf32>
    %14 = arith.truncf %13 : vector<8x128xf32> to vector<8x128xbf16>
    %c0_5 = arith.constant 0 : index
    %c0_6 = arith.constant 0 : index
    %15 = vector.load %arg3[%c0_5, %c0_6] : memref<128x256xbf16, #tpu.memory_space<vmem>>, vector<128x256xbf16>
    %cst_7 = arith.constant dense<0.000000e+00> : vector<8x256xf32>
    %16 = tpu.matmul %14, %15, %cst_7 {dimension_numbers = #tpu.dot_dimension_numbers<[1], [0], [0], [1], [0, 0, 1, 1], [], []>} : vector<8x128xbf16>, vector<128x256xbf16>, vector<8x256xf32> -> vector<8x256xf32>
    %c0_8 = arith.constant 0 : index
    %c0_9 = arith.constant 0 : index
    %17 = vector.load %arg4[%c0_8, %c0_9] : memref<8x256xf32, #tpu.memory_space<vmem>>, vector<8x256xf32>
    tpu.vector_store %arg4[%c0_8, %c0_9], %16 {strides = array<i32>} : memref<8x256xf32, #tpu.memory_space<vmem>>, vector<8x256xf32>,
    return
  }
  func.func @transform_0(%arg0: i32) -> (i32, i32) {
    %c0_i32 = arith.constant 0 : i32
    %c0_i32_0 = arith.constant 0 : i32
    return %arg0, %c0_i32 : i32, i32
  }
  func.func @transform_1(%arg0: i32) -> (i32, i32) {
    %c0_i32 = arith.constant 0 : i32
    %c0_i32_0 = arith.constant 0 : i32
    %c0_i32_1 = arith.constant 0 : i32
    return %c0_i32, %c0_i32_0 : i32, i32
  }
  func.func @transform_2(%arg0: i32) -> (i32, i32) {
    %c0_i32 = arith.constant 0 : i32
    %c0_i32_0 = arith.constant 0 : i32
    %c0_i32_1 = arith.constant 0 : i32
    return %c0_i32, %c0_i32_0 : i32, i32
  }
  func.func @transform_3(%arg0: i32) -> (i32, i32) {
    %c0_i32 = arith.constant 0 : i32
    %c0_i32_0 = arith.constant 0 : i32
    return %arg0, %c0_i32 : i32, i32
  }
}

</mosaic_0001>

<bundles_post_ra>
// kernel: moe_forward.9
= control target key start
LH: loop header
LB: loop body
LE: loop exit
PB: predicated region body
PF: predicated region fallthrough
CT: control target
= control target key end

     0   :  { %8 = vsyncpa [#allocation3], 0  ;;  %s807_s0 = inlined_call_operand.vmem [shape: f32[16,128], index: 0, kind: input, shape index: {}]   ;;  %s808_s1 = inlined_call_operand.vmem [shape: f32[1,128], index: 1, kind: input, shape index: {}]   ;;  %s809_s2 = inlined_call_operand.vmem [shape: bf16[128,256], index: 2, kind: input, shape index: {}]   ;;  %s810_s3 = inlined_call_operand.hbm [shape: f32[16,256], index: 3, kind: output, shape index: {}]  }
   0x1   :  { %10 = vsyncpa [#allocation3 + $0x1], 0  ;;  %s618_s12 = smov 0   ;;  %s620_s13 = smov 0  }
   0x2   :  { %s622_s14 = smov 0   ;;  %s624_s15 = smov 0  }
   0x3 LB: > { %s639_s16 = sadd.s32 4294967295, %s595_s15   ;;  %s396_s17 = sadd.s32 4294967294, %s595_s15   ;;  %s595_s15 = sphi %s624_s15, %s816_s15   ;;  %s591_s14 = sphi %s622_s14, %s815_s14   ;;  %s587_s13 = sphi %s620_s13, %s814_s13   ;;  %s583_s12 = sphi %s618_s12, %s813_s12  }
   0x4   : > { %s643_s18 = sadd.s32 1, %s595_s15   ;;  %s91_s19 = sadd.s32 1, %s591_s14 }
   0x5   : > { %s88_s20 = ssub.s32 %s595_s15, %s643_s18  ;;  %p101_p0 = scmp.ne.s32.totalorder %s591_s14, %s587_s13 }
   0x6   : > { %p89_p1 = scmp.eq.s32.totalorder %s88_s20, 0  ;;  %p102_p2 = scmp.eq.s32.totalorder %s639_s16, 1 }
   0x7   : > { %p107_p3 = scmp.ne.s32.totalorder %s587_s13, %s583_s12  ;;  %p108_p4 = scmp.eq.s32.totalorder %s396_s17, 1 }
   0x8   : > { %s654_s21 = scalar_select %p89_p1, %s591_s14, %s91_s19  }
   0x9   : > { %p656_p5 = por %p102_p2, %p101_p0  ;;  %p660_p6 = por %p108_p4, %p107_p3 }
   0xa   : > { %p399_p7 = scmp.ge.s32.totalorder %s595_s15, 1  ;;  %p139_p8 = scmp.lt.s32.totalorder %s595_s15, 3 }
   0xc   : > { %p140_p9 = pnand %p399_p7, %p139_p8 }
   0xd   : > { %p162_p10 = scmp.lt.s32.totalorder (!%p140_p9), %s639_s16, 1  ;;  %s159_s20 = sand.u32 (!%p140_p9), 1, %s587_s13  }
   0xe   : > { %143 = sbr.rel (%p140_p9) target bundleno = 305 (0x131), region = 32  ;;  %s487_s24 = sshll.u32 (!%p140_p9), %s639_s16, 4 }
   0xf   : > { %s400_s25 = sshll.u32 (!%p140_p9), %s159_s20, 4  ;;  %s332_s28 = scalar_lea.hbm (!%p140_p9), %s810_s3, %s487_s24 }
  0x10   : > { %s161_s29 = scalar_lea.vmem (!%p140_p9), [#allocation2], %s400_s25  ;;  %s336_s4 = sshll.u32 (!%p140_p9), %s332_s28, 4  ;;  %s337_s4 = int_to_ptr.hbm [resolvable:$true] %s336_s4 }
  0x11   : > { %s334_s30 = sshll.u32 (!%p140_p9), %s161_s29, 4  ;;  %s335_s30 = int_to_ptr.vmem [resolvable:$true] %s334_s30 }
  0x13   : > { %v460_v0 = vld [vmem:[%s809_s2 + $0x70] sm:$0xf]  ;;  %v486_v1 = vld [vmem:[%s809_s2 + $0x74] sm:$0xf0]  ;;  %v485_v3 = vld [vmem:[%s809_s2 + $0x74] sm:$0xf] }
  0x14   : > { %v461_v2 = vor.u32 %v486_v1, %v460_v0  ;;  %v462_v4 = vld [vmem:[%s809_s2 + $0x78] sm:$0xf0]  ;;  %s163_s5 = scalar_select %p162_p10, %s639_s16, 1  ;;  %v452_v8 = vld [vmem:[%s809_s2 + $0x60] sm:$0xf]  ;;  %v597_v17 = vmov 128.0  }
  0x15   : > { %v465_v5 = vor.u32 %v485_v3, %v462_v4  ;;  %v484_v9 = vld [vmem:[%s809_s2 + $0x64] sm:$0xf0]  ;;  %v483_v10 = vld [vmem:[%s809_s2 + $0x64] sm:$0xf]  ;;  %v454_v12 = vld [vmem:[%s809_s2 + $0x68] sm:$0xf0]  ;;  %529 = vrcp.f32 %v597_v17 }
  0x16   : > { %292 = vmatpush.bf16.msra.mxu0 %v461_v2  ;;  %s401_s6 = sshll.u32 %s163_s5, 3  ;;  %v453_v11 = vor.u32 %v484_v9, %v452_v8  ;;  %v457_v13 = vor.u32 %v483_v10, %v454_v12  ;;  %v444_v14 = vld [vmem:[%s809_s2 + $0x50] sm:$0xf]  ;;  %v482_v15 = vld [vmem:[%s809_s2 + $0x54] sm:$0xf0]  ;;  %s321_s5 = scalar_lea.sflag [#allocation3], %s159_s20 }
  0x17   : > { %305 = vmatpush.bf16.msra.mxu1 %v465_v5  ;;  %s165_s9 = scalar_lea.vmem %s807_s0, %s401_s6  ;;  %v481_v16 = vld [vmem:[%s809_s2 + $0x54] sm:$0xf]  ;;  %v445_v18 = vor.u32 %v482_v15, %v444_v14  ;;  %v446_v19 = vld [vmem:[%s809_s2 + $0x58] sm:$0xf0]  ;;  %v436_v21 = vld [vmem:[%s809_s2 + $0x40] sm:$0xf] }
  0x18   : > { %v683_v6 = vld [vmem:[%s165_s9] sm:$0xff]  ;;  %v449_v20 = vor.u32 %v481_v16, %v446_v19  ;;  %v480_v22 = vld [vmem:[%s809_s2 + $0x44] sm:$0xf0]  ;;  %v438_v25 = vld [vmem:[%s809_s2 + $0x48] sm:$0xf0]  ;;  %s547_s6 = sshra.s32 %s337_s4, 4  ;;  %s548_s6 = int_to_ptr.hbm [resolvable:$true] %s547_s6 }
  0x19   : > { %v167_v7 = vmul.f32 %v683_v6, %v683_v6  ;;  %v479_v23 = vld [vmem:[%s809_s2 + $0x44] sm:$0xf]  ;;  %v437_v24 = vor.u32 %v480_v22, %v436_v21  ;;  %v428_v28 = vld [vmem:[%s809_s2 + $0x30] sm:$0xf]  ;;  %v478_v29 = vld [vmem:[%s809_s2 + $0x34] sm:$0xf0]  ;;  %p554_p0 = scmp.lt.s32.totalorder %s548_s6, %s810_s3 }
  0x1a   : > { %293 = vmatpush.bf16.msra.mxu0 %v453_v11  ;;  %v441_v26 = vor.u32 %v479_v23, %v438_v25  ;;  %v477_v30 = vld [vmem:[%s809_s2 + $0x34] sm:$0xf]  ;;  %v429_v31 = vor.u32 %v478_v29, %v428_v28  ;;  %v430_v32 = vld [vmem:[%s809_s2 + $0x38] sm:$0xf0]  ;;  %v420_v35 = vld [vmem:[%s809_s2 + $0x20] sm:$0xf] }
  0x1b   : > { %168 = vadd.xlane.f32.xlu0 %v167_v7  ;;  %306 = vmatpush.bf16.msra.mxu1 %v457_v13  ;;  %v530_v27 = vpop.eup %529  ;;  %v433_v34 = vor.u32 %v477_v30, %v430_v32  ;;  %v476_v36 = vld [vmem:[%s809_s2 + $0x24] sm:$0xf0]  ;;  %v475_v37 = vld [vmem:[%s809_s2 + $0x24] sm:$0xf]  ;;  %v422_v39 = vld [vmem:[%s809_s2 + $0x28] sm:$0xf0] }
  0x1c   : > { %v171_v33 = vmul.f32 128.0, %v530_v27  ;;  %v421_v38 = vor.u32 %v476_v36, %v420_v35  ;;  %v425_v41 = vor.u32 %v475_v37, %v422_v39  ;;  %v412_v42 = vld [vmem:[%s809_s2 + $0x10] sm:$0xf]  ;;  %v474_v43 = vld [vmem:[%s809_s2 + $0x14] sm:$0xf0]  ;;  %vm175_vm0 = vweird.f32 %v530_v27  ;;  %s549_s7 = scalar_lea.hbm %s548_s6, 16 }
  0x1d   : > { %v473_v44 = vld [vmem:[%s809_s2 + $0x14] sm:$0xf]  ;;  %v413_v45 = vor.u32 %v474_v43, %v412_v42  ;;  %v414_v46 = vld [vmem:[%s809_s2 + $0x18] sm:$0xf0]  ;;  %v404_v47 = vld [vmem:[%s809_s2] sm:$0xf]  ;;  %p550_p11 = scmp.ne.s32.totalorder %s548_s6, %s549_s7 }
  0x1e   : > { %294 = vmatpush.bf16.msra.mxu0 %v445_v18  ;;  %v172_v40 = vsub.f32 1.0, %v171_v33  ;;  %v472_v48 = vld [vmem:[%s809_s2 + $0x4] sm:$0xf0]  ;;  %v417_v49 = vor.u32 %v473_v44, %v414_v46  ;;  %v471_v50 = vld [vmem:[%s809_s2 + $0x4] sm:$0xf]  ;;  %s553_s9 = scalar_lea.hbm %s810_s3, 32 }
  0x1f   : > { %307 = vmatpush.bf16.msra.mxu1 %v449_v20  ;;  %v406_v51 = vld [vmem:[%s809_s2 + $0x8] sm:$0xf0]  ;;  %v405_v53 = vor.u32 %v472_v48, %v404_v47  ;;  %v528_v2 = vld [vmem:[%s808_s1] ss:$0 sm:$0xff]  ;;  %p551_p12 = pnand %p550_p11, %p656_p5  ;;  %p555_p1 = scmp.lt.s32.totalorder %s553_s9, %s549_s7 }
  0x20   : > { %v173_v52 = vmul.f32 %v530_v27, %v172_v40  ;;  %v409_v54 = vor.u32 %v471_v50, %v406_v51 }
  0x21   : > { %p552_p13 = pneg %p551_p12  ;;  %p556_p2 = por %p555_p1, %p554_p0 }
  0x22   : > { %295 = vmatpush.bf16.msra.mxu0 %v437_v24  ;;  %v174_v55 = vadd.f32 %v530_v27, %v173_v52 }
  0x23   : > { %308 = vmatpush.bf16.msra.mxu1 %v441_v26  ;;  %p557_p3 = pnand %p556_p2, %p552_p13 }
  0x24   : > { %v176_v56 = vsel %vm175_vm0, %v530_v27, %v174_v55 }
  0x26   : > { %296 = vmatpush.bf16.msra.mxu0 %v429_v31 }
  0x27   : > { %309 = vmatpush.bf16.msra.mxu1 %v433_v34 }
  0x2a   : > { %297 = vmatpush.bf16.msra.mxu0 %v421_v38 }
  0x2b   : > { %310 = vmatpush.bf16.msra.mxu1 %v425_v41 }
  0x2e   : > { %298 = vmatpush.bf16.msra.mxu0 %v413_v45 }
  0x2f   : > { %311 = vmatpush.bf16.msra.mxu1 %v417_v49 }
  0x32   : > { %299 = vmatpush.bf16.msra.mxu0 %v405_v53 }
  0x33   : > { %312 = vmatpush.bf16.msra.mxu1 %v409_v54 }
  0x8e   : > { %v169_v57 = vpop.xlane.xlu0 %168 }
  0x8f   : > { %v177_v58 = vmul.f32 %v176_v56, %v169_v57 }
  0x91   : > { %v178_v59 = vadd.f32 1e-06, %v177_v58 }
  0x93   : > { %531 = vrsqrt.f32 %v178_v59  ;;  %vm185_vm2 = vweird.f32 %v178_v59 }
  0x99   : > { %v532_v60 = vpop.eup %531 }
  0x9a   : > { %v180_v61 = vmul.f32 %v532_v60, %v178_v59  ;;  %vm186_vm1 = vweird.f32 %v532_v60 }
  0x9b   : > { %vm187_vm3 = vmor %vm185_vm2, %vm186_vm1 }
  0x9c   : > { %v181_v62 = vmul.f32 %v532_v60, %v180_v61 }
  0x9e   : > { %v182_v63 = vmul.f32 0.5, %v181_v62 }
  0xa0   : > { %v183_v0 = vsub.f32 1.5, %v182_v63 }
  0xa2   : > { %v184_v1 = vmul.f32 %v532_v60, %v183_v0 }
  0xa4   : > { %v188_v3 = vsel %vm187_vm3, %v532_v60, %v184_v1 }
  0xa5   : > { %v189_v4 = vmul.f32 %v188_v3, %v683_v6 }
  0xa7   : > { %v194_v5 = vmul.f32 %v528_v2, %v189_v4 }
  0xa9   : > { %v195_v7 = vpack.c.bf16 %v194_v5, %v194_v5 }
  0xab   : > { %300 = vmatmul.bf16.vlgmr.msra.gmra.mxu0 %v195_v7  ;;  %313 = vmatmul.bf16.vlgmr.msra.gmra.mxu1 %v195_v7 }
 0x128   : > { %v301_v8 = vpop.f32.mrf.mxu0  ;;  %v314_v9 = vpop.f32.mrf.mxu1 }
 0x129   : > { %318 = vst [vmem:[%s161_s29] sm:$0xff] %v301_v8 }
 0x12a   : > { %319 = vst [vmem:[%s161_s29 + $0x8] sm:$0xff] %v314_v9 }
 0x12b   : > { %560 = shalt.err (!%p557_p3)
}
 0x12c   : > { %488 = dma.vmem_to_hbm [thread:$0]  (%p656_p5), %s335_s30, 256, %s337_s4, %s321_s5  }
 0x130   : > { %v303_v6 = vpop.f32.mrf.mxu0  ;;  %v316_v10 = vpop.f32.mrf.mxu1 }
 0x131 PF: > { %p494_p4 = scmp.ge.s32.totalorder %s595_s15, 2  ;;  %s348_s17 = sand.u32 1, %s583_s12  }
 0x132   : > { %s349_s19 = scalar_lea.sflag [#allocation3], %s348_s17 }
 0x133   : > { %p491_p7 = pnand %p494_p4, %p660_p6 }
 0x135   : > { %p492_p8 = pneg %p491_p7 }
 0x137   : > { %578 = dma.done.wait (%p492_p8), %s349_s19, 256  }
 0x138   : > { %580 = vsyncadd (%p492_p8), %s349_s19, 4294967040  ;;  %p13_p5 = scmp.ge.s32.totalorder %s643_s18, 4   ;;  %s813_s12 = smov %s587_s13 }
 0x139   : > { %s814_s13 = smov %s591_s14  ;;  %s815_s14 = smov %s654_s21 }
 0x13a   : > { %s816_s15 = smov %s643_s18  ;;  %15 = sbr.rel (!%p13_p5) target bundleno = 3 (0x3), region = 67 }
 0x13f   :  { %355 = vsyncpa [#allocation3], 1 }
 0x140   :  { %357 = vsyncpa [#allocation3 + $0x1], 1 }

// kernel: moe_forward.6
= control target key start
LH: loop header
LB: loop body
LE: loop exit
PB: predicated region body
PF: predicated region fallthrough
CT: control target
= control target key end

     0   :  { %s880_s15 = smov 0   ;;  %s1186_s0 = inlined_call_operand.vmem [shape: f32[16,128], index: 0, kind: input, shape index: {}]   ;;  %s1187_s1 = inlined_call_operand.vmem [shape: f32[1,128], index: 1, kind: input, shape index: {}]   ;;  %s1188_s2 = inlined_call_operand.vmem [shape: f32[128,4], index: 2, kind: input, shape index: {}]   ;;  %s1189_s3 = inlined_call_operand.vmem [shape: bf16[128,512], index: 3, kind: input, shape index: {}]   ;;  %s1190_s4 = inlined_call_operand.vmem [shape: f32[16,128], index: 4, kind: output, shape index: {}]  }
   0x1 LB: > { %s644_s16 = sadd.s32 4294967295, %s848_s15   ;;  %p648_p0 = scmp.ge.s32.totalorder %s848_s15, 1  ;;  %s848_s15 = sphi %s880_s15, %s14_s15  }
   0x2   : > { %p161_p1 = scmp.lt.s32.totalorder %s848_s15, 3 }
   0x4   : > { %p162_p2 = pnand %p648_p0, %p161_p1 }
   0x5   : > { %p185_p3 = scmp.lt.s32.totalorder (!%p162_p2), %s644_s16, 1 }
   0x6   : > { %165 = sbr.rel (%p162_p2) target bundleno = 1142 (0x476), region = 36 }
   0xb   : > { %v237_v0 = vld [vmem:[%s1188_s2 + $0x78] sm:$0xff]  ;;  %v236_v1 = vld [vmem:[%s1188_s2 + $0x70] sm:$0xff]  ;;  %s1192_s16 = smov (!%p185_p3, %s644_s16), 1  ;;  %v235_v2 = vld [vmem:[%s1188_s2 + $0x68] sm:$0xff]  ;;  %v850_v42 = vmov 128.0   ;;  %vm260_vm4 = vcmask 31744  }
   0xc   : > { %238 = vmatpush.msra.mxu0 %v237_v0  ;;  %s649_s23 = sshll.u32 %s1192_s16, 3  ;;  %v234_v3 = vld [vmem:[%s1188_s2 + $0x60] sm:$0xff]  ;;  %v811_v5 = vld [vmem:[%s1189_s3 + $0xec] sm:$0xf0]  ;;  %v767_v8 = vld [vmem:[%s1189_s3 + $0xf0] sm:$0xf0]  ;;  %832 = vrcp.f32 %v850_v42 }
   0xd   : > { %v765_v4 = vld [vmem:[%s1189_s3 + $0xe0] sm:$0xf]  ;;  %s188_s6 = scalar_lea.vmem %s1186_s0, %s649_s23  ;;  %v809_v7 = vld [vmem:[%s1189_s3 + $0xe4] sm:$0xf]  ;;  %v773_v9 = vld [vmem:[%s1189_s3 + $0xe8] sm:$0xf]  ;;  %s192_s24 = scalar_lea.vmem %s1190_s4, %s649_s23 }
   0xe   : > { %239 = vmatpush.msra.mxu0 %v236_v1  ;;  %v766_v6 = vor.u32 %v811_v5, %v765_v4  ;;  %v923_v10 = vld [vmem:[%s188_s6] sm:$0xff]  ;;  %v233_v11 = vld [vmem:[%s1188_s2 + $0x58] sm:$0xff]  ;;  %v770_v12 = vor.u32 %v809_v7, %v767_v8  ;;  %v232_v16 = vld [vmem:[%s1188_s2 + $0x50] sm:$0xff] }
   0xf   : > { %v812_v13 = vld [vmem:[%s1189_s3 + $0xf4] sm:$0xf0]  ;;  %v194_v14 = vmul.f32 %v923_v10, %v923_v10  ;;  %v231_v17 = vld [vmem:[%s1188_s2 + $0x48] sm:$0xff]  ;;  %v230_v18 = vld [vmem:[%s1188_s2 + $0x40] sm:$0xff] }
  0x10   : > { %240 = vmatpush.msra.mxu0 %v235_v2  ;;  %512 = vmatpush.bf16.msra.mxu1 %v766_v6  ;;  %v774_v15 = vor.u32 %v812_v13, %v773_v9  ;;  %v229_v19 = vld [vmem:[%s1188_s2 + $0x38] sm:$0xff]  ;;  %v228_v20 = vld [vmem:[%s1188_s2 + $0x30] sm:$0xff]  ;;  %v227_v21 = vld [vmem:[%s1188_s2 + $0x28] sm:$0xff] }
  0x11   : > { %525 = vmatpush.bf16.msra.mxu2 %v770_v12  ;;  %195 = vadd.xlane.f32.xlu0 %v194_v14  ;;  %v226_v22 = vld [vmem:[%s1188_s2 + $0x20] sm:$0xff]  ;;  %v225_v23 = vld [vmem:[%s1188_s2 + $0x18] sm:$0xff]  ;;  %v224_v24 = vld [vmem:[%s1188_s2 + $0x10] sm:$0xff] }
  0x12   : > { %241 = vmatpush.msra.mxu0 %v234_v3  ;;  %538 = vmatpush.bf16.msra.mxu3 %v774_v15  ;;  %v749_v25 = vld [vmem:[%s1189_s3 + $0xc0] sm:$0xf]  ;;  %v807_v26 = vld [vmem:[%s1189_s3 + $0xcc] sm:$0xf0]  ;;  %v805_v27 = vld [vmem:[%s1189_s3 + $0xc4] sm:$0xf]  ;;  %v1038_v63 = vpop.eup %832 }
  0x13   : > { %v223_v28 = vld [vmem:[%s1188_s2 + $0x8] sm:$0xff]  ;;  %v750_v29 = vor.u32 %v807_v26, %v749_v25  ;;  %v751_v30 = vld [vmem:[%s1189_s3 + $0xd0] sm:$0xf0]  ;;  %v808_v33 = vld [vmem:[%s1189_s3 + $0xd4] sm:$0xf0]  ;;  %v198_v8 = vmul.f32 128.0, %v1038_v63  ;;  %vm202_vm0 = vweird.f32 %v1038_v63 }
  0x14   : > { %242 = vmatpush.msra.mxu0 %v233_v11  ;;  %v757_v31 = vld [vmem:[%s1189_s3 + $0xc8] sm:$0xf]  ;;  %v754_v32 = vor.u32 %v805_v27, %v751_v30  ;;  %v810_v34 = vld [vmem:[%s1189_s3 + $0xec] sm:$0xf]  ;;  %v775_v35 = vld [vmem:[%s1189_s3 + $0xf8] sm:$0xf0] }
  0x15   : > { %513 = vmatpush.bf16.msra.mxu1 %v750_v29  ;;  %v758_v36 = vor.u32 %v808_v33, %v757_v31  ;;  %v222_v37 = vld [vmem:[%s1188_s2] sm:$0xff]  ;;  %v778_v38 = vor.u32 %v810_v34, %v775_v35  ;;  %v803_v40 = vld [vmem:[%s1189_s3 + $0xac] sm:$0xf0]  ;;  %v735_v44 = vld [vmem:[%s1189_s3 + $0xb0] sm:$0xf0] }
  0x16   : > { %243 = vmatpush.msra.mxu0 %v232_v16  ;;  %526 = vmatpush.bf16.msra.mxu2 %v754_v32  ;;  %v733_v39 = vld [vmem:[%s1189_s3 + $0xa0] sm:$0xf]  ;;  %v801_v41 = vld [vmem:[%s1189_s3 + $0xa4] sm:$0xf]  ;;  %v741_v45 = vld [vmem:[%s1189_s3 + $0xa8] sm:$0xf] }
  0x17   : > { %539 = vmatpush.bf16.msra.mxu3 %v758_v36  ;;  %v734_v43 = vor.u32 %v803_v40, %v733_v39  ;;  %v804_v46 = vld [vmem:[%s1189_s3 + $0xb4] sm:$0xf0]  ;;  %v738_v47 = vor.u32 %v801_v41, %v735_v44  ;;  %v806_v49 = vld [vmem:[%s1189_s3 + $0xcc] sm:$0xf]  ;;  %v759_v50 = vld [vmem:[%s1189_s3 + $0xd8] sm:$0xf0] }
  0x18   : > { %244 = vmatpush.msra.mxu0 %v231_v17  ;;  %v742_v48 = vor.u32 %v804_v46, %v741_v45  ;;  %v762_v51 = vor.u32 %v806_v49, %v759_v50  ;;  %v717_v52 = vld [vmem:[%s1189_s3 + $0x80] sm:$0xf]  ;;  %v799_v53 = vld [vmem:[%s1189_s3 + $0x8c] sm:$0xf0]  ;;  %v797_v54 = vld [vmem:[%s1189_s3 + $0x84] sm:$0xf] }
  0x19   : > { %514 = vmatpush.bf16.msra.mxu1 %v734_v43  ;;  %v718_v55 = vor.u32 %v799_v53, %v717_v52  ;;  %v719_v56 = vld [vmem:[%s1189_s3 + $0x90] sm:$0xf0]  ;;  %v725_v57 = vld [vmem:[%s1189_s3 + $0x88] sm:$0xf]  ;;  %v800_v58 = vld [vmem:[%s1189_s3 + $0x94] sm:$0xf0] }
  0x1a   : > { %245 = vmatpush.msra.mxu0 %v230_v18  ;;  %527 = vmatpush.bf16.msra.mxu2 %v738_v47  ;;  %v722_v59 = vor.u32 %v797_v54, %v719_v56  ;;  %v726_v60 = vor.u32 %v800_v58, %v725_v57  ;;  %v802_v61 = vld [vmem:[%s1189_s3 + $0xac] sm:$0xf]  ;;  %v743_v62 = vld [vmem:[%s1189_s3 + $0xb8] sm:$0xf0]  ;;  %v701_v1 = vld [vmem:[%s1189_s3 + $0x60] sm:$0xf] }
  0x1b   : > { %540 = vmatpush.bf16.msra.mxu3 %v742_v48  ;;  %v746_v0 = vor.u32 %v802_v61, %v743_v62  ;;  %v795_v2 = vld [vmem:[%s1189_s3 + $0x6c] sm:$0xf0]  ;;  %v793_v3 = vld [vmem:[%s1189_s3 + $0x64] sm:$0xf]  ;;  %v703_v5 = vld [vmem:[%s1189_s3 + $0x70] sm:$0xf0] }
  0x1c   : > { %246 = vmatpush.msra.mxu0 %v229_v19  ;;  %v702_v4 = vor.u32 %v795_v2, %v701_v1  ;;  %v709_v6 = vld [vmem:[%s1189_s3 + $0x68] sm:$0xf]  ;;  %v796_v7 = vld [vmem:[%s1189_s3 + $0x74] sm:$0xf0]  ;;  %v706_v9 = vor.u32 %v793_v3, %v703_v5  ;;  %v798_v12 = vld [vmem:[%s1189_s3 + $0x8c] sm:$0xf] }
  0x1d   : > { %515 = vmatpush.bf16.msra.mxu1 %v718_v55  ;;  %v710_v11 = vor.u32 %v796_v7, %v709_v6  ;;  %v727_v13 = vld [vmem:[%s1189_s3 + $0x98] sm:$0xf0]  ;;  %v685_v15 = vld [vmem:[%s1189_s3 + $0x40] sm:$0xf]  ;;  %v791_v16 = vld [vmem:[%s1189_s3 + $0x4c] sm:$0xf0] }
  0x1e   : > { %247 = vmatpush.msra.mxu0 %v228_v20  ;;  %528 = vmatpush.bf16.msra.mxu2 %v722_v59  ;;  %v730_v14 = vor.u32 %v798_v12, %v727_v13  ;;  %v789_v17 = vld [vmem:[%s1189_s3 + $0x44] sm:$0xf]  ;;  %v686_v18 = vor.u32 %v791_v16, %v685_v15  ;;  %v687_v19 = vld [vmem:[%s1189_s3 + $0x50] sm:$0xf0]  ;;  %v693_v20 = vld [vmem:[%s1189_s3 + $0x48] sm:$0xf] }
  0x1f   : > { %541 = vmatpush.bf16.msra.mxu3 %v726_v60  ;;  %v794_v25 = vld [vmem:[%s1189_s3 + $0x6c] sm:$0xf]  ;;  %v711_v26 = vld [vmem:[%s1189_s3 + $0x78] sm:$0xf0]  ;;  %v787_v29 = vld [vmem:[%s1189_s3 + $0x2c] sm:$0xf0] }
  0x20   : > { %248 = vmatpush.msra.mxu0 %v227_v21  ;;  %v792_v21 = vld [vmem:[%s1189_s3 + $0x54] sm:$0xf0]  ;;  %v714_v27 = vor.u32 %v794_v25, %v711_v26  ;;  %v785_v30 = vld [vmem:[%s1189_s3 + $0x24] sm:$0xf]  ;;  %v671_v32 = vld [vmem:[%s1189_s3 + $0x30] sm:$0xf0] }
  0x21   : > { %516 = vmatpush.bf16.msra.mxu1 %v702_v4  ;;  %v677_v33 = vld [vmem:[%s1189_s3 + $0x28] sm:$0xf]  ;;  %v788_v34 = vld [vmem:[%s1189_s3 + $0x34] sm:$0xf0]  ;;  %v674_v35 = vor.u32 %v785_v30, %v671_v32  ;;  %v653_v39 = vld [vmem:[%s1189_s3] sm:$0xf] }
  0x22   : > { %249 = vmatpush.msra.mxu0 %v226_v22  ;;  %529 = vmatpush.bf16.msra.mxu2 %v706_v9  ;;  %v199_v22 = vsub.f32 1.0, %v198_v8  ;;  %v678_v36 = vor.u32 %v788_v34, %v677_v33  ;;  %v783_v41 = vld [vmem:[%s1189_s3 + $0xc] sm:$0xf0]  ;;  %v781_v42 = vld [vmem:[%s1189_s3 + $0x4] sm:$0xf] }
  0x23   : > { %542 = vmatpush.bf16.msra.mxu3 %v710_v11  ;;  %v655_v43 = vld [vmem:[%s1189_s3 + $0x10] sm:$0xf0]  ;;  %v654_v45 = vor.u32 %v783_v41, %v653_v39  ;;  %v661_v46 = vld [vmem:[%s1189_s3 + $0x8] sm:$0xf]  ;;  %v784_v47 = vld [vmem:[%s1189_s3 + $0x14] sm:$0xf0] }
  0x24   : > { %250 = vmatpush.msra.mxu0 %v225_v23  ;;  %v690_v23 = vor.u32 %v789_v17, %v687_v19  ;;  %v200_v44 = vmul.f32 %v1038_v63, %v199_v22  ;;  %v658_v48 = vor.u32 %v781_v42, %v655_v43  ;;  %v662_v49 = vor.u32 %v784_v47, %v661_v46  ;;  %v786_v50 = vld [vmem:[%s1189_s3 + $0x2c] sm:$0xf]  ;;  %v663_v56 = vld [vmem:[%s1189_s3 + $0x18] sm:$0xf0]  ;;  %v831_v3 = vld [vmem:[%s1187_s1] ss:$0 sm:$0xff] }
  0x25   : > { %517 = vmatpush.bf16.msra.mxu1 %v686_v18  ;;  %v782_v55 = vld [vmem:[%s1189_s3 + $0xc] sm:$0xf]  ;;  %v258_v19 = vlaneseq }
  0x26   : > { %251 = vmatpush.msra.mxu0 %v224_v24  ;;  %v694_v24 = vor.u32 %v792_v21, %v693_v20  ;;  %530 = vmatpush.bf16.msra.mxu2 %v690_v23  ;;  %v201_v52 = vadd.f32 %v1038_v63, %v200_v44  ;;  %v666_v57 = vor.u32 %v782_v55, %v663_v56 }
  0x27   : > { %v1160_v20 = vand.u32 127, %v258_v19 }
  0x28   : > { %252 = vmatpush.msra.mxu0 %v223_v28  ;;  %v669_v28 = vld [vmem:[%s1189_s3 + $0x20] sm:$0xf]  ;;  %543 = vmatpush.bf16.msra.mxu3 %v694_v24  ;;  %v203_v54 = vsel %vm202_vm0, %v1038_v63, %v201_v52  ;;  %v852_v52 = vmov 1  }
  0x29   : > { %v670_v31 = vor.u32 %v787_v29, %v669_v28  ;;  %827 = vset.pattern.permute.xlu2 %v852_v52 }
  0x2a   : > { %253 = vmatpush.msra.mxu0 %v222_v37  ;;  %v790_v37 = vld [vmem:[%s1189_s3 + $0x4c] sm:$0xf]  ;;  %531 = vmatpush.bf16.msra.mxu2 %v674_v35 }
  0x2b   : > { %518 = vmatpush.bf16.msra.mxu1 %v670_v31 }
  0x2c   : > { %551 = vmatpush.bf16.msrb.mxu0 %v778_v38  ;;  %v695_v38 = vld [vmem:[%s1189_s3 + $0x58] sm:$0xf0]  ;;  %544 = vmatpush.bf16.msra.mxu3 %v678_v36 }
  0x2d   : > { %v698_v40 = vor.u32 %v790_v37, %v695_v38 }
  0x2e   : > { %532 = vmatpush.bf16.msra.mxu2 %v658_v48 }
  0x2f   : > { %519 = vmatpush.bf16.msra.mxu1 %v654_v45 }
  0x30   : > { %552 = vmatpush.bf16.msrb.mxu0 %v762_v51  ;;  %v679_v51 = vld [vmem:[%s1189_s3 + $0x38] sm:$0xf0]  ;;  %545 = vmatpush.bf16.msra.mxu3 %v662_v49 }
  0x31   : > { %v682_v53 = vor.u32 %v786_v50, %v679_v51  ;;  %v851_v51 = vmov 2  }
  0x32   : > { %828 = vset.pattern.permute.xlu0 %v851_v51 }
  0x34   : > { %553 = vmatpush.bf16.msrb.mxu0 %v746_v0 }
  0x38   : > { %554 = vmatpush.bf16.msrb.mxu0 %v730_v14 }
  0x3c   : > { %555 = vmatpush.bf16.msrb.mxu0 %v714_v27 }
  0x40   : > { %556 = vmatpush.bf16.msrb.mxu0 %v698_v40 }
  0x44   : > { %557 = vmatpush.bf16.msrb.mxu0 %v682_v53  ;;  %v853_v53 = vmov 0  }
  0x45   : > { %826 = vset.pattern.permute.xlu1 %v853_v53 }
  0x48   : > { %558 = vmatpush.bf16.msrb.mxu0 %v666_v57 }
  0x84   : > { %v196_v58 = vpop.xlane.xlu0 %195 }
  0x85   : > { %v204_v59 = vmul.f32 %v203_v54, %v196_v58 }
  0x87   : > { %v205_v60 = vadd.f32 1e-06, %v204_v59 }
  0x89   : > { %834 = vrsqrt.f32 %v205_v60  ;;  %vm212_vm2 = vweird.f32 %v205_v60 }
  0x8f   : > { %v835_v61 = vpop.eup %834 }
  0x90   : > { %v207_v62 = vmul.f32 %v835_v61, %v205_v60  ;;  %vm213_vm1 = vweird.f32 %v835_v61 }
  0x91   : > { %vm214_vm3 = vmor %vm212_vm2, %vm213_vm1 }
  0x92   : > { %v208_v0 = vmul.f32 %v835_v61, %v207_v62 }
  0x94   : > { %v209_v1 = vmul.f32 0.5, %v208_v0 }
  0x96   : > { %v210_v2 = vsub.f32 1.5, %v209_v1 }
  0x98   : > { %v211_v63 = vmul.f32 %v835_v61, %v210_v2 }
  0x9a   : > { %v215_v4 = vsel %vm214_vm3, %v835_v61, %v211_v63 }
  0x9b   : > { %v216_v5 = vmul.f32 %v215_v4, %v923_v10  ;;  %v854_v4 = vmov 3  }
  0x9d   : > { %v221_v6 = vmul.f32 %v831_v3, %v216_v5 }
  0x9f   : > { %254 = vmatmul.f32.vlgmr.msra.gmra.mxu0 %v221_v6  ;;  %v319_v7 = vpack.c.bf16 %v221_v6, %v221_v6 }
  0xa1   : > { %520 = vmatmul.bf16.vlgmr.msra.gmra.mxu1 %v319_v7  ;;  %533 = vmatmul.bf16.vlgmr.msra.gmra.mxu2 %v319_v7 }
  0xa2   : > { %546 = vmatmul.bf16.vlgmr.msra.gmra.mxu3 %v319_v7 }
  0xa7   : > { %559 = vmatmul.bf16.vlgmr.msrb.gmra.mxu0 %v319_v7 }
 0x11c   : > { %v255_v8 = vpop.f32.mrf.mxu0 }
 0x11d   : > { %v261_v9 = vsel %vm260_vm4, %v255_v8, -inf }
 0x11e   : > { %v1152_v11 = vpop.f32.mrf.mxu1  ;;  %262 = vmax.xlane.f32.xlu0 %v261_v9 }
 0x124   : > { %v1154_v12 = vpop.f32.mrf.mxu2  ;;  %v1156_v13 = vpop.f32.mrf.mxu0 }
 0x125   : > { %v1158_v14 = vpop.f32.mrf.mxu3 }
 0x126   : > { %v523_v15 = vpop.f32.mrf.mxu1 }
 0x12c   : > { %v536_v16 = vpop.f32.mrf.mxu2  ;;  %v562_v17 = vpop.f32.mrf.mxu0 }
 0x12d   : > { %v549_v18 = vpop.f32.mrf.mxu3 }
 0x191   : > { %v263_v21 = vpop.xlane.xlu0 %262 }
 0x192   : > { %vm264_vm5 = vcmp.eq.f32.partialorder %v255_v8, %v263_v21 }
 0x193   : > { %v265_v22 = vsel %vm264_vm5, %v1160_v20, 4 }
 0x194   : > { %v266_v23 = vsel %vm260_vm4, %v265_v22, 2147483647 }
 0x195   : > { %v268_v24 = vshra.s32 %v266_v23, 16  ;;  %v267_v26 = vand.u32 65535, %v266_v23 }
 0x197   : > { %v270_v25 = vcvt.s32.f32 %v268_v24  ;;  %v269_v28 = vcvt.s32.f32 %v267_v26 }
 0x199   : > { %271 = vmin.xlane.f32.xlu1 %v270_v25 }
 0x20c   : > { %v272_v27 = vpop.xlane.xlu1 %271 }
 0x20d   : > { %vm273_vm6 = vcmp.eq.f32.partialorder %v270_v25, %v272_v27  ;;  %v278_v30 = vcvt.f32.s32 %v272_v27 }
 0x20e   : > { %v274_v29 = vsel %vm273_vm6, %v269_v28, inf }
 0x20f   : > { %275 = vmin.xlane.f32.xlu1 %v274_v29  ;;  %v279_v32 = vshll.u32 %v278_v30, 16 }
 0x282   : > { %v276_v31 = vpop.xlane.xlu1 %275 }
 0x283   : > { %v277_v33 = vcvt.f32.s32 %v276_v31 }
 0x285   : > { %v280_v34 = vadd.s32 %v279_v32, %v277_v33 }
 0x287   : > { %vm281_vm7 = vcmp.eq.s32.totalorder %v1160_v20, %v280_v34 }
 0x288   : > { %v282_v35 = vsel %vm281_vm7, -1e+30, %v255_v8 }
 0x289   : > { %v283_v36 = vsel %vm260_vm4, %v282_v35, -inf }
 0x28a   : > { %284 = vmax.xlane.f32.xlu2 %v283_v36 }
 0x2fd   : > { %v285_v37 = vpop.xlane.xlu2 %284 }
 0x2fe   : > { %vm286_vm8 = vcmp.eq.f32.partialorder %v282_v35, %v285_v37  ;;  %v304_v46 = vmax.f32 %v263_v21, %v285_v37 }
 0x2ff   : > { %v287_v38 = vsel %vm286_vm8, %v1160_v20, 4 }
 0x300   : > { %v288_v39 = vsel %vm260_vm4, %v287_v38, 2147483647  ;;  %v305_v47 = vsub.f32 %v263_v21, %v304_v46  ;;  %v308_v48 = vsub.f32 %v285_v37, %v304_v46 }
 0x301   : > { %v290_v40 = vshra.s32 %v288_v39, 16  ;;  %v289_v42 = vand.u32 65535, %v288_v39 }
 0x302   : > { %v306_v49 = vmul.f32 1.442695, %v305_v47  ;;  %v309_v50 = vmul.f32 1.442695, %v308_v48 }
 0x303   : > { %v292_v41 = vcvt.s32.f32 %v290_v40  ;;  %v291_v44 = vcvt.s32.f32 %v289_v42 }
 0x304   : > { %836 = vpow2.f32 %v306_v49 }
 0x305   : > { %293 = vmin.xlane.f32.xlu2 %v292_v41  ;;  %838 = vpow2.f32 %v309_v50 }
 0x30a   : > { %v837_v54 = vpop.eup %836 }
 0x30b   : > { %v839_v55 = vpop.eup %838 }
 0x30c   : > { %v311_v56 = vadd.f32 %v839_v55, %v837_v54 }
 0x30e   : > { %840 = vrcp.f32 %v311_v56 }
 0x314   : > { %v841_v58 = vpop.eup %840 }
 0x315   : > { %v313_v62 = vmul.f32 %v841_v58, %v837_v54  ;;  %v316_v1 = vmul.f32 %v841_v58, %v839_v55 }
 0x317   : > { %v314_v2 = vsel %vm281_vm7, %v313_v62, 0.0 }
 0x378   : > { %v294_v43 = vpop.xlane.xlu2 %293 }
 0x379   : > { %vm295_vm9 = vcmp.eq.f32.partialorder %v292_v41, %v294_v43  ;;  %v300_v57 = vcvt.f32.s32 %v294_v43 }
 0x37a   : > { %v296_v45 = vsel %vm295_vm9, %v291_v44, inf }
 0x37b   : > { %297 = vmin.xlane.f32.xlu0 %v296_v45  ;;  %v301_v60 = vshll.u32 %v300_v57, 16 }
 0x3ee   : > { %v298_v59 = vpop.xlane.xlu0 %297 }
 0x3ef   : > { %v299_v61 = vcvt.f32.s32 %v298_v59 }
 0x3f1   : > { %v302_v0 = vadd.s32 %v301_v60, %v299_v61 }
 0x3f3   : > { %vm303_vm10 = vcmp.eq.s32.totalorder %v1160_v20, %v302_v0 }
 0x3f4   : > { %v317_v63 = vsel %vm303_vm10, %v316_v1, 0.0 }
 0x3f5   : > { %v318_v3 = vadd.f32 %v317_v63, %v314_v2 }
 0x3f7   : > { %578 = vperm.xlu0 %828, %v318_v3   ;;  %572 = vperm.xlu2 %827, %v318_v3  }
 0x3f8   : > { %566 = vperm.xlu1 %826, %v318_v3  }
 0x3ff   : > { %829 = vset.pattern.permute.xlu2 %v854_v4  ;;  %830 = vset.pattern.permute.xlu0 %v854_v4 }
 0x400   : > { %584 = vperm.xlu2 %829, %v318_v3  }
 0x451   : > { %v573_v5 = vpop.permute.xlu2 %572 }
 0x452   : > { %v575_v8 = vmul.f32 %v573_v5, %v1154_v12 }
 0x45a   : > { %v585_v15 = vpop.permute.xlu2 %584 }
 0x45b   : > { %v587_v18 = vmul.f32 %v585_v15, %v1156_v13 }
 0x469   : > { %v579_v6 = vpop.permute.xlu0 %578 }
 0x46a   : > { %v567_v7 = vpop.permute.xlu1 %566  ;;  %v581_v16 = vmul.f32 %v579_v6, %v1158_v14 }
 0x46b   : > { %v569_v9 = vmul.f32 %v567_v7, %v1152_v11 }
 0x46d   : > { %v576_v17 = vadd.f32 %v575_v8, %v569_v9 }
 0x46f   : > { %v582_v19 = vadd.f32 %v581_v16, %v576_v17 }
 0x471   : > { %v588_v20 = vadd.f32 %v587_v18, %v582_v19 }
 0x473   : > { %v589_v21 = vadd.f32 %v588_v20, %v923_v10 }
 0x475   : > { %590 = vst [vmem:[%s192_s24] sm:$0xff] %v589_v21 }
 0x476 PF: > { %s14_s15 = sadd.s32 1, %s848_s15  }
 0x477   : > { %p11_p4 = scmp.ge.s32.totalorder %s14_s15, 4  }
 0x479   :  { %13 = sbr.rel (!%p11_p4) target bundleno = 1 (0x1), region = 66 }

// kernel: moe_forward.5
= control target key start
LH: loop header
LB: loop body
LE: loop exit
PB: predicated region body
PF: predicated region fallthrough
CT: control target
= control target key end

     0   :  { %s1065_s15 = smov 0   ;;  %s1292_s0 = inlined_call_operand.vmem [shape: f32[2,8,128], index: 0, kind: input, shape index: {}]   ;;  %s1293_s1 = inlined_call_operand.vmem [shape: f32[1,128], index: 1, kind: input, shape index: {}]   ;;  %s1294_s2 = inlined_call_operand.vmem [shape: bf16[128,192], index: 2, kind: input, shape index: {}]   ;;  %s1295_s3 = inlined_call_operand.vmem [shape: bf16[128,128], index: 3, kind: input, shape index: {}]   ;;  %s1296_s4 = inlined_call_operand.vmem [shape: f32[2,8,128], index: 4, kind: output, shape index: {}]  }
   0x1 LB: > { %s832_s16 = sadd.s32 4294967295, %s1029_s15   ;;  %p836_p0 = scmp.ge.s32.totalorder %s1029_s15, 1  ;;  %s1029_s15 = sphi %s1065_s15, %s14_s15  }
   0x2   : > { %p161_p1 = scmp.lt.s32.totalorder %s1029_s15, 3 }
   0x4   : > { %p162_p2 = pnand %p836_p0, %p161_p1 }
   0x5   : > { %p185_p3 = scmp.lt.s32.totalorder (!%p162_p2), %s832_s16, 1  ;;  %s1032_s17 = smov (!%p162_p2), 96  }
   0x6   : > { %165 = sbr.rel (%p162_p2) target bundleno = 1680 (0x690), region = 36  ;;  %s1033_s18 = smov (!%p162_p2), 112  }
   0x7   : > { %s1034_s19 = smov (!%p162_p2), 80   ;;  %s1036_s20 = smov (!%p162_p2), 64  }
   0x8   : > { %s1037_s21 = smov (!%p162_p2), 48   ;;  %s1038_s22 = smov (!%p162_p2), 16  }
   0x9   : > { %s1039_s23 = smov (!%p162_p2), 32  }
   0xb   : > { %v897_v0 = vld [vmem:[%s1294_s2 + $0x70] sm:$0xf]  ;;  %v960_v1 = vld [vmem:[%s1294_s2 + $0x74] sm:$0xf0]  ;;  %v959_v3 = vld [vmem:[%s1294_s2 + $0x74] sm:$0xf] }
   0xc   : > { %v898_v2 = vor.u32 %v960_v1, %v897_v0  ;;  %v899_v4 = vld [vmem:[%s1294_s2 + $0x78] sm:$0xf0]  ;;  %s1298_s16 = smov (!%p185_p3, %s832_s16), 1  ;;  %v889_v8 = vld [vmem:[%s1294_s2 + $0x60] sm:$0xf]  ;;  %v1031_v17 = vmov 128.0  }
   0xd   : > { %v902_v5 = vor.u32 %v959_v3, %v899_v4  ;;  %s837_s25 = sshll.u32 %s1298_s16, 3  ;;  %v958_v9 = vld [vmem:[%s1294_s2 + $0x64] sm:$0xf0]  ;;  %v957_v10 = vld [vmem:[%s1294_s2 + $0x64] sm:$0xf]  ;;  %987 = vrcp.f32 %v1031_v17  ;;  %vm422_vm4 = vcmask 130048  }
   0xe   : > { %320 = vmatpush.bf16.msra.mxu0 %v898_v2  ;;  %s188_s28 = scalar_lea.vmem %s1292_s0, %s837_s25  ;;  %v890_v11 = vor.u32 %v958_v9, %v889_v8  ;;  %v891_v12 = vld [vmem:[%s1294_s2 + $0x68] sm:$0xf0]  ;;  %v881_v14 = vld [vmem:[%s1294_s2 + $0x50] sm:$0xf]  ;;  %v956_v15 = vld [vmem:[%s1294_s2 + $0x54] sm:$0xf0] }
   0xf   : > { %333 = vmatpush.bf16.msra.mxu1 %v902_v5  ;;  %v1093_v6 = vld [vmem:[%s188_s28] sm:$0xff]  ;;  %v894_v13 = vor.u32 %v957_v10, %v891_v12  ;;  %v955_v16 = vld [vmem:[%s1294_s2 + $0x54] sm:$0xf]  ;;  %v882_v18 = vor.u32 %v956_v15, %v881_v14  ;;  %v883_v19 = vld [vmem:[%s1294_s2 + $0x58] sm:$0xf0]  ;;  %vm459_vm6 = vcmask 64512  }
  0x10   : > { %v195_v7 = vmul.f32 %v1093_v6, %v1093_v6  ;;  %v886_v20 = vor.u32 %v955_v16, %v883_v19  ;;  %v873_v21 = vld [vmem:[%s1294_s2 + $0x40] sm:$0xf]  ;;  %v954_v22 = vld [vmem:[%s1294_s2 + $0x44] sm:$0xf0]  ;;  %v953_v23 = vld [vmem:[%s1294_s2 + $0x44] sm:$0xf]  ;;  %v346_v19 = vlaneseq }
  0x11   : > { %v874_v24 = vor.u32 %v954_v22, %v873_v21  ;;  %v875_v25 = vld [vmem:[%s1294_s2 + $0x48] sm:$0xf0]  ;;  %v865_v28 = vld [vmem:[%s1294_s2 + $0x30] sm:$0xf]  ;;  %v952_v29 = vld [vmem:[%s1294_s2 + $0x34] sm:$0xf0] }
  0x12   : > { %196 = vadd.xlane.f32.xlu0 %v195_v7  ;;  %321 = vmatpush.bf16.msra.mxu0 %v890_v11  ;;  %v878_v26 = vor.u32 %v953_v23, %v875_v25  ;;  %v951_v30 = vld [vmem:[%s1294_s2 + $0x34] sm:$0xf]  ;;  %v866_v31 = vor.u32 %v952_v29, %v865_v28  ;;  %v867_v32 = vld [vmem:[%s1294_s2 + $0x38] sm:$0xf0]  ;;  %v857_v35 = vld [vmem:[%s1294_s2 + $0x20] sm:$0xf] }
  0x13   : > { %334 = vmatpush.bf16.msra.mxu1 %v894_v13  ;;  %v988_v27 = vpop.eup %987  ;;  %v870_v34 = vor.u32 %v951_v30, %v867_v32  ;;  %v950_v36 = vld [vmem:[%s1294_s2 + $0x24] sm:$0xf0]  ;;  %v949_v37 = vld [vmem:[%s1294_s2 + $0x24] sm:$0xf]  ;;  %v859_v39 = vld [vmem:[%s1294_s2 + $0x28] sm:$0xf0] }
  0x14   : > { %v199_v33 = vmul.f32 128.0, %v988_v27  ;;  %v858_v38 = vor.u32 %v950_v36, %v857_v35  ;;  %v862_v41 = vor.u32 %v949_v37, %v859_v39  ;;  %v849_v42 = vld [vmem:[%s1294_s2 + $0x10] sm:$0xf]  ;;  %v948_v43 = vld [vmem:[%s1294_s2 + $0x14] sm:$0xf0]  ;;  %vm203_vm0 = vweird.f32 %v988_v27 }
  0x15   : > { %v947_v44 = vld [vmem:[%s1294_s2 + $0x14] sm:$0xf]  ;;  %v850_v45 = vor.u32 %v948_v43, %v849_v42  ;;  %v851_v46 = vld [vmem:[%s1294_s2 + $0x18] sm:$0xf0]  ;;  %v841_v47 = vld [vmem:[%s1294_s2] sm:$0xf] }
  0x16   : > { %322 = vmatpush.bf16.msra.mxu0 %v882_v18  ;;  %v200_v40 = vsub.f32 1.0, %v199_v33  ;;  %v946_v48 = vld [vmem:[%s1294_s2 + $0x4] sm:$0xf0]  ;;  %v854_v49 = vor.u32 %v947_v44, %v851_v46  ;;  %v945_v50 = vld [vmem:[%s1294_s2 + $0x4] sm:$0xf]  ;;  %v400_v22 = vand.u32 127, %v346_v19 }
  0x17   : > { %335 = vmatpush.bf16.msra.mxu1 %v886_v20  ;;  %v843_v51 = vld [vmem:[%s1294_s2 + $0x8] sm:$0xf0]  ;;  %v842_v53 = vor.u32 %v946_v48, %v841_v47  ;;  %v986_v2 = vld [vmem:[%s1293_s1] ss:$0 sm:$0xff]  ;;  %v347_v20 = vshrl.u32 %v346_v19, 7  ;;  %vm515_vm10 = vcmask 1043456  }
  0x18   : > { %v201_v52 = vmul.f32 %v988_v27, %v200_v40  ;;  %v846_v54 = vor.u32 %v945_v50, %v843_v51  ;;  %v1035_v25 = vmov -1e+30   ;;  %vm687_vm11 = vcmask 261120  }
  0x19   : > { %v355_v21 = vand.u32 7, %v347_v20  ;;  %v348_v23 = vadd.s32 8, %v347_v20  ;;  %vm689_vm12 = vcmask 392192   ;;  %vm691_vm13 = vcmask 523264  }
  0x1a   : > { %323 = vmatpush.bf16.msra.mxu0 %v874_v24  ;;  %v202_v55 = vadd.f32 %v988_v27, %v201_v52  ;;  %vm693_vm14 = vcmask 654336   ;;  %vm695_vm15 = vcmask 785408  }
  0x1b   : > { %336 = vmatpush.bf16.msra.mxu1 %v878_v26  ;;  %vm401_vm5 = vcmp.ge.s32.totalorder %v355_v21, %v400_v22  ;;  %v362_v28 = vand.u32 7, %v348_v23 }
  0x1c   : > { %v204_v56 = vsel %vm203_vm0, %v988_v27, %v202_v55  ;;  %v1200_v26 = vsel %vm401_vm5, 0.0, %v1035_v25  ;;  %vm697_vm0 = vcmask 916480  }
  0x1d   : > { %vm402_vm7 = vcmp.ge.s32.totalorder %v362_v28, %v400_v22 }
  0x1e   : > { %324 = vmatpush.bf16.msra.mxu0 %v866_v31  ;;  %v349_v31 = vadd.s32 16, %v347_v20  ;;  %v1204_v33 = vsel %vm402_vm7, 0.0, %v1035_v25 }
  0x1f   : > { %337 = vmatpush.bf16.msra.mxu1 %v870_v34 }
  0x20   : > { %v369_v35 = vand.u32 7, %v349_v31 }
  0x22   : > { %325 = vmatpush.bf16.msra.mxu0 %v858_v38  ;;  %vm403_vm8 = vcmp.ge.s32.totalorder %v369_v35, %v400_v22  ;;  %v350_v38 = vadd.s32 24, %v347_v20 }
  0x23   : > { %338 = vmatpush.bf16.msra.mxu1 %v862_v41  ;;  %v1208_v40 = vsel %vm403_vm8, 0.0, %v1035_v25 }
  0x24   : > { %v376_v42 = vand.u32 7, %v350_v38 }
  0x26   : > { %326 = vmatpush.bf16.msra.mxu0 %v850_v45  ;;  %vm404_vm9 = vcmp.ge.s32.totalorder %v376_v42, %v400_v22 }
  0x27   : > { %339 = vmatpush.bf16.msra.mxu1 %v854_v49  ;;  %v1212_v46 = vsel %vm404_vm9, 0.0, %v1035_v25 }
  0x2a   : > { %327 = vmatpush.bf16.msra.mxu0 %v842_v53 }
  0x2b   : > { %340 = vmatpush.bf16.msra.mxu1 %v846_v54 }
  0x85   : > { %v197_v57 = vpop.xlane.xlu0 %196 }
  0x86   : > { %v205_v58 = vmul.f32 %v204_v56, %v197_v57 }
  0x88   : > { %v206_v59 = vadd.f32 1e-06, %v205_v58 }
  0x8a   : > { %989 = vrsqrt.f32 %v206_v59  ;;  %vm213_vm2 = vweird.f32 %v206_v59 }
  0x90   : > { %v990_v60 = vpop.eup %989 }
  0x91   : > { %v208_v61 = vmul.f32 %v990_v60, %v206_v59  ;;  %vm214_vm1 = vweird.f32 %v990_v60 }
  0x92   : > { %vm215_vm3 = vmor %vm213_vm2, %vm214_vm1 }
  0x93   : > { %v209_v62 = vmul.f32 %v990_v60, %v208_v61 }
  0x95   : > { %v210_v63 = vmul.f32 0.5, %v209_v62 }
  0x97   : > { %v211_v0 = vsub.f32 1.5, %v210_v63 }
  0x99   : > { %v212_v1 = vmul.f32 %v990_v60, %v211_v0 }
  0x9b   : > { %v216_v3 = vsel %vm215_vm3, %v990_v60, %v212_v1 }
  0x9c   : > { %v217_v4 = vmul.f32 %v216_v3, %v1093_v6 }
  0x9e   : > { %v222_v5 = vmul.f32 %v986_v2, %v217_v4 }
  0xa0   : > { %v223_v7 = vpack.c.bf16 %v222_v5, %v222_v5 }
  0xa2   : > { %328 = vmatmul.bf16.vlgmr.msra.gmra.mxu0 %v223_v7  ;;  %341 = vmatmul.bf16.vlgmr.msra.gmra.mxu1 %v223_v7 }
 0x11f   : > { %v329_v8 = vpop.f32.mrf.mxu0  ;;  %v342_v9 = vpop.f32.mrf.mxu1 }
 0x120   : > { %v1185_v10 = vpack.c.bf16 %v342_v9, %v342_v9  ;;  %413 = vrot.lane.b32.xlu1 %v329_v8, %s1032_s17  ;;  %410 = vrot.lane.b32.xlu0 %v329_v8, %s1033_s18 }
 0x122   : > { %v430_v11 = vsel %vm422_vm4, %v1185_v10, 0 }
 0x123   : > { %439 = vmatpush.bf16.xpose.msra.mxu2 %v430_v11 }
 0x127   : > { %v331_v12 = vpop.f32.mrf.mxu0  ;;  %v344_v13 = vpop.f32.mrf.mxu1 }
 0x128   : > { %416 = vrot.lane.b32.xlu1 %v329_v8, %s1034_s19 }
 0x192   : > { %v411_v14 = vpop.permute.xlu0 %410  ;;  %v414_v16 = vpop.permute.xlu1 %413 }
 0x193   : > { %v1192_v15 = vpack.c.bf16 %v411_v14, %v329_v8 }
 0x195   : > { %903 = vmatmul.msk.bf16.vlgmr.msra.gmra.mxu2 %vm422_vm4, %v1192_v15 }
 0x19a   : > { %v417_v17 = vpop.permute.xlu1 %416 }
 0x19b   : > { %v1196_v18 = vpack.c.bf16 %v417_v17, %v414_v16 }
 0x1a5   : > { %904 = vmatmul.msk.bf16.gmra.mxu2 %vm422_vm4, %v1196_v18 }
 0x218   : > { %v441_v24 = vpop.f32.mrf.mxu2 }
 0x219   : > { %v451_v27 = vmul.f32 0.25, %v441_v24 }
 0x21b   : > { %v455_v29 = vadd.f32 %v451_v27, %v1200_v26 }
 0x21d   : > { %v460_v30 = vsel %vm459_vm6, %v455_v29, -inf }
 0x21e   : > { %461 = vmax.xlane.f32.xlu2 %v460_v30 }
 0x220   : > { %v443_v32 = vpop.f32.mrf.mxu2 }
 0x221   : > { %v452_v34 = vmul.f32 0.25, %v443_v32 }
 0x223   : > { %v456_v36 = vadd.f32 %v452_v34, %v1204_v33 }
 0x225   : > { %v463_v37 = vsel %vm459_vm6, %v456_v36, -inf }
 0x226   : > { %464 = vmax.xlane.f32.xlu2 %v463_v37 }
 0x228   : > { %v446_v39 = vpop.f32.mrf.mxu2 }
 0x229   : > { %v453_v41 = vmul.f32 0.25, %v446_v39 }
 0x22b   : > { %v457_v43 = vadd.f32 %v453_v41, %v1208_v40 }
 0x22d   : > { %v466_v44 = vsel %vm459_vm6, %v457_v43, -inf }
 0x22e   : > { %467 = vmax.xlane.f32.xlu1 %v466_v44 }
 0x230   : > { %v448_v45 = vpop.f32.mrf.mxu2 }
 0x231   : > { %v454_v47 = vmul.f32 0.25, %v448_v45 }
 0x233   : > { %v458_v48 = vadd.f32 %v454_v47, %v1212_v46 }
 0x235   : > { %v469_v49 = vsel %vm459_vm6, %v458_v48, -inf }
 0x236   : > { %470 = vmax.xlane.f32.xlu2 %v469_v49 }
 0x291   : > { %v462_v50 = vpop.xlane.xlu2 %461 }
 0x292   : > { %v472_v51 = vsub.f32 %v455_v29, %v462_v50 }
 0x294   : > { %v476_v52 = vmul.f32 1.442695, %v472_v51 }
 0x296   : > { %991 = vpow2.f32 %v476_v52 }
 0x299   : > { %v465_v53 = vpop.xlane.xlu2 %464 }
 0x29a   : > { %v473_v54 = vsub.f32 %v456_v36, %v465_v53 }
 0x29c   : > { %v992_v55 = vpop.eup %991  ;;  %v478_v56 = vmul.f32 1.442695, %v473_v54 }
 0x29d   : > { %v484_v57 = vsel %vm459_vm6, %v992_v55, 0.0 }
 0x29e   : > { %993 = vpow2.f32 %v478_v56  ;;  %485 = vadd.xlane.f32.xlu2 %v484_v57 }
 0x2a1   : > { %v468_v1 = vpop.xlane.xlu1 %467 }
 0x2a2   : > { %v474_v2 = vsub.f32 %v457_v43, %v468_v1 }
 0x2a4   : > { %v994_v58 = vpop.eup %993  ;;  %v480_v3 = vmul.f32 1.442695, %v474_v2 }
 0x2a5   : > { %v487_v59 = vsel %vm459_vm6, %v994_v58, 0.0 }
 0x2a6   : > { %488 = vadd.xlane.f32.xlu0 %v487_v59 }
 0x2a9   : > { %v471_v60 = vpop.xlane.xlu2 %470 }
 0x2aa   : > { %v475_v61 = vsub.f32 %v458_v48, %v471_v60 }
 0x2ac   : > { %v482_v62 = vmul.f32 1.442695, %v475_v61 }
 0x2ae   : > { %995 = vpow2.f32 %v482_v62 }
 0x2af   : > { %997 = vpow2.f32 %v480_v3 }
 0x2b4   : > { %v996_v63 = vpop.eup %995 }
 0x2b5   : > { %v493_v0 = vsel %vm459_vm6, %v996_v63, 0.0  ;;  %v998_v4 = vpop.eup %997 }
 0x2b6   : > { %507 = vrot.lane.b32.xlu2 %v1185_v10, %s1032_s17  ;;  %494 = vadd.xlane.f32.xlu1 %v493_v0  ;;  %v490_v5 = vsel %vm459_vm6, %v998_v4, 0.0 }
 0x2ba   : > { %540 = vrot.lane.b32.xlu0 %v1192_v15, %s1036_s20 }
 0x2c2   : > { %542 = vrot.lane.b32.xlu0 %v1196_v18, %s1036_s20 }
 0x2cf   : > { %544 = vrot.lane.b32.xlu1 %v1185_v10, %s1033_s18 }
 0x2df   : > { %491 = vadd.xlane.f32.xlu2 %v490_v5 }
 0x311   : > { %v486_v7 = vpop.xlane.xlu2 %485 }
 0x312   : > { %999 = vrcp.f32 %v486_v7 }
 0x318   : > { %v1000_v12 = vpop.eup %999 }
 0x319   : > { %v489_v8 = vpop.xlane.xlu0 %488  ;;  %v508_v9 = vpop.permute.xlu2 %507  ;;  %v500_v14 = vmul.f32 %v1000_v12, %v992_v55 }
 0x31a   : > { %1001 = vrcp.f32 %v489_v8  ;;  %v517_v11 = vsel %vm515_vm10, %v508_v9, 0 }
 0x31b   : > { %526 = vmatpush.bf16.msra.mxu3 %v517_v11 }
 0x320   : > { %v1002_v13 = vpop.eup %1001 }
 0x321   : > { %v501_v15 = vmul.f32 %v1002_v13, %v994_v58 }
 0x323   : > { %v504_v16 = vpack.c.bf16 %v501_v15, %v500_v14 }
 0x325   : > { %905 = vmatmul.msk.bf16.vlgmr.msra.gmra.mxu3 %vm459_vm6, %v504_v16 }
 0x329   : > { %v495_v17 = vpop.xlane.xlu1 %494 }
 0x32a   : > { %1003 = vrcp.f32 %v495_v17 }
 0x32c   : > { %v541_v27 = vpop.permute.xlu0 %540 }
 0x330   : > { %v1004_v21 = vpop.eup %1003 }
 0x331   : > { %v503_v24 = vmul.f32 %v1004_v21, %v996_v63 }
 0x334   : > { %v543_v28 = vpop.permute.xlu0 %542 }
 0x341   : > { %v545_v18 = vpop.permute.xlu1 %544 }
 0x342   : > { %v553_v19 = vsel %vm422_vm4, %v545_v18, 0 }
 0x343   : > { %562 = vmatpush.bf16.xpose.msrb.mxu3 %v553_v19 }
 0x352   : > { %v492_v20 = vpop.xlane.xlu2 %491 }
 0x353   : > { %1005 = vrcp.f32 %v492_v20 }
 0x359   : > { %v1006_v22 = vpop.eup %1005 }
 0x35a   : > { %v502_v23 = vmul.f32 %v1006_v22, %v998_v4 }
 0x35c   : > { %v505_v25 = vpack.c.bf16 %v503_v24, %v502_v23 }
 0x35e   : > { %906 = vmatmul.msk.bf16.gmra.mxu3 %vm459_vm6, %v505_v25  ;;  %v968_v25 = vld [vmem:[%s1295_s3 + $0x38] sm:$0xff] }
 0x35f   : > { %764 = vmatpush.bf16.msrb.mxu0 %v968_v25 }
 0x36e   : > { %907 = vmatmul.msk.bf16.vlgmr.msrb.gmra.mxu3 %vm422_vm4, %v541_v27  ;;  %v967_v27 = vld [vmem:[%s1295_s3 + $0x30] sm:$0xff] }
 0x36f   : > { %765 = vmatpush.bf16.msrb.mxu0 %v967_v27 }
 0x37e   : > { %908 = vmatmul.msk.bf16.gmra.mxu3 %vm422_vm4, %v543_v28  ;;  %v966_v28 = vld [vmem:[%s1295_s3 + $0x28] sm:$0xff] }
 0x37f   : > { %766 = vmatpush.bf16.msrb.mxu0 %v966_v28 }
 0x3a8   : > { %v1234_v29 = vpop.f32.mrf.mxu3 }
 0x3b0   : > { %v530_v30 = vpop.f32.mrf.mxu3 }
 0x3e1   : > { %v533_v31 = vpop.f32.mrf.mxu3 }
 0x3e9   : > { %v535_v32 = vpop.f32.mrf.mxu3 }
 0x3f1   : > { %v564_v34 = vpop.f32.mrf.mxu3 }
 0x3f2   : > { %v574_v35 = vmul.f32 0.25, %v564_v34  ;;  %v962_v34 = vld [vmem:[%s1295_s3 + $0x8] sm:$0xff] }
 0x3f4   : > { %v578_v36 = vadd.f32 %v574_v35, %v1200_v26  ;;  %v961_v35 = vld [vmem:[%s1295_s3] sm:$0xff] }
 0x3f6   : > { %v582_v37 = vsel %vm459_vm6, %v578_v36, -inf }
 0x3f7   : > { %583 = vmax.xlane.f32.xlu1 %v582_v37 }
 0x3f9   : > { %v566_v38 = vpop.f32.mrf.mxu3 }
 0x3fa   : > { %v575_v39 = vmul.f32 0.25, %v566_v38 }
 0x3fc   : > { %v579_v41 = vadd.f32 %v575_v39, %v1204_v33 }
 0x3fe   : > { %v585_v42 = vsel %vm459_vm6, %v579_v41, -inf }
 0x3ff   : > { %586 = vmax.xlane.f32.xlu2 %v585_v42 }
 0x401   : > { %v569_v43 = vpop.f32.mrf.mxu3 }
 0x402   : > { %v576_v44 = vmul.f32 0.25, %v569_v43 }
 0x404   : > { %v580_v45 = vadd.f32 %v576_v44, %v1208_v40 }
 0x406   : > { %v588_v47 = vsel %vm459_vm6, %v580_v45, -inf }
 0x407   : > { %589 = vmax.xlane.f32.xlu0 %v588_v47 }
 0x409   : > { %v571_v48 = vpop.f32.mrf.mxu3 }
 0x40a   : > { %v577_v49 = vmul.f32 0.25, %v571_v48 }
 0x40c   : > { %v581_v26 = vadd.f32 %v577_v49, %v1212_v46 }
 0x40e   : > { %v591_v50 = vsel %vm459_vm6, %v581_v26, -inf }
 0x40f   : > { %592 = vmax.xlane.f32.xlu2 %v591_v50 }
 0x46a   : > { %v584_v51 = vpop.xlane.xlu1 %583 }
 0x46b   : > { %v594_v52 = vsub.f32 %v578_v36, %v584_v51 }
 0x46d   : > { %v598_v33 = vmul.f32 1.442695, %v594_v52 }
 0x46f   : > { %1007 = vpow2.f32 %v598_v33 }
 0x472   : > { %v587_v53 = vpop.xlane.xlu2 %586 }
 0x473   : > { %v595_v54 = vsub.f32 %v579_v41, %v587_v53 }
 0x475   : > { %v1008_v55 = vpop.eup %1007  ;;  %v600_v56 = vmul.f32 1.442695, %v595_v54 }
 0x476   : > { %v606_v40 = vsel %vm459_vm6, %v1008_v55, 0.0 }
 0x477   : > { %1009 = vpow2.f32 %v600_v56  ;;  %607 = vadd.xlane.f32.xlu2 %v606_v40 }
 0x47a   : > { %v590_v57 = vpop.xlane.xlu0 %589 }
 0x47b   : > { %v596_v58 = vsub.f32 %v580_v45, %v590_v57 }
 0x47d   : > { %v1010_v59 = vpop.eup %1009  ;;  %v602_v60 = vmul.f32 1.442695, %v596_v58 }
 0x47e   : > { %v609_v46 = vsel %vm459_vm6, %v1010_v59, 0.0 }
 0x47f   : > { %1011 = vpow2.f32 %v602_v60  ;;  %610 = vadd.xlane.f32.xlu2 %v609_v46 }
 0x482   : > { %v593_v61 = vpop.xlane.xlu2 %592 }
 0x483   : > { %v597_v62 = vsub.f32 %v581_v26, %v593_v61 }
 0x485   : > { %v1012_v63 = vpop.eup %1011  ;;  %v604_v0 = vmul.f32 1.442695, %v597_v62 }
 0x486   : > { %v612_v1 = vsel %vm459_vm6, %v1012_v63, 0.0 }
 0x487   : > { %1013 = vpow2.f32 %v604_v0  ;;  %613 = vadd.xlane.f32.xlu1 %v612_v1 }
 0x48d   : > { %v1014_v2 = vpop.eup %1013 }
 0x48e   : > { %v615_v3 = vsel %vm459_vm6, %v1014_v2, 0.0 }
 0x48f   : > { %616 = vadd.xlane.f32.xlu0 %v615_v3 }
 0x497   : > { %628 = vrot.lane.b32.xlu2 %v1185_v10, %s1034_s19 }
 0x49f   : > { %667 = vrot.lane.b32.xlu2 %v535_v32, %s1037_s21  ;;  %v963_v32 = vld [vmem:[%s1295_s3 + $0x10] sm:$0xff] }
 0x4a0   : > { %659 = vrot.lane.b32.xlu1 %v530_v30, %s1038_s22  ;;  %v965_v30 = vld [vmem:[%s1295_s3 + $0x20] sm:$0xff] }
 0x4a1   : > { %767 = vmatpush.bf16.msrb.mxu0 %v965_v30 }
 0x4a3   : > { %663 = vrot.lane.b32.xlu0 %v533_v31, %s1039_s23  ;;  %v964_v31 = vld [vmem:[%s1295_s3 + $0x18] sm:$0xff] }
 0x4a5   : > { %768 = vmatpush.bf16.msrb.mxu0 %v964_v31 }
 0x4a9   : > { %769 = vmatpush.bf16.msrb.mxu0 %v963_v32 }
 0x4ad   : > { %770 = vmatpush.bf16.msrb.mxu0 %v962_v34 }
 0x4b1   : > { %771 = vmatpush.bf16.msrb.mxu0 %v961_v35 }
 0x4ea   : > { %v608_v4 = vpop.xlane.xlu2 %607 }
 0x4eb   : > { %1015 = vrcp.f32 %v608_v4 }
 0x4f1   : > { %v1016_v7 = vpop.eup %1015 }
 0x4f2   : > { %v611_v5 = vpop.xlane.xlu2 %610  ;;  %v622_v9 = vmul.f32 %v1016_v7, %v1008_v55 }
 0x4f3   : > { %1017 = vrcp.f32 %v611_v5 }
 0x4f9   : > { %v1018_v8 = vpop.eup %1017 }
 0x4fa   : > { %v623_v11 = vmul.f32 %v1018_v8, %v1010_v59  ;;  %v629_v12 = vpop.permute.xlu2 %628  ;;  %v614_v10 = vpop.xlane.xlu1 %613 }
 0x4fb   : > { %v637_v13 = vsel %vm515_vm10, %v629_v12, 0  ;;  %1019 = vrcp.f32 %v614_v10 }
 0x4fc   : > { %646 = vmatpush.bf16.msrb.mxu2 %v637_v13  ;;  %v626_v14 = vpack.c.bf16 %v623_v11, %v622_v9 }
 0x4ff   : > { %909 = vmatmul.msk.bf16.vlgmr.msrb.gmra.mxu2 %vm459_vm6, %v626_v14 }
 0x501   : > { %v1020_v16 = vpop.eup %1019 }
 0x502   : > { %v617_v15 = vpop.xlane.xlu0 %616  ;;  %v624_v18 = vmul.f32 %v1020_v16, %v1012_v63  ;;  %v668_v36 = vpop.permute.xlu2 %667 }
 0x503   : > { %1021 = vrcp.f32 %v617_v15 }
 0x509   : > { %v1022_v17 = vpop.eup %1021 }
 0x50a   : > { %v625_v19 = vmul.f32 %v1022_v17, %v1014_v2 }
 0x50c   : > { %v627_v20 = vpack.c.bf16 %v625_v19, %v624_v18 }
 0x50f   : > { %910 = vmatmul.msk.bf16.gmra.mxu2 %vm459_vm6, %v627_v20 }
 0x512   : > { %v660_v37 = vpop.permute.xlu1 %659 }
 0x513   : > { %v686_v41 = vsel %vm422_vm4, %v1234_v29, %v660_v37 }
 0x515   : > { %v664_v38 = vpop.permute.xlu0 %663 }
 0x516   : > { %v688_v42 = vsel %vm687_vm11, %v686_v41, %v664_v38 }
 0x517   : > { %v690_v44 = vsel %vm689_vm12, %v688_v42, %v668_v36 }
 0x582   : > { %v648_v21 = vpop.f32.mrf.mxu2 }
 0x583   : > { %671 = vrot.lane.b32.xlu2 %v648_v21, %s1036_s20 }
 0x58a   : > { %v650_v22 = vpop.f32.mrf.mxu2 }
 0x58b   : > { %675 = vrot.lane.b32.xlu1 %v650_v22, %s1034_s19  ;;  %s192_s19 = scalar_lea.vmem %s1296_s4, %s837_s25 }
 0x592   : > { %v653_v23 = vpop.f32.mrf.mxu2 }
 0x593   : > { %679 = vrot.lane.b32.xlu0 %v653_v23, %s1032_s17 }
 0x59a   : > { %v655_v24 = vpop.f32.mrf.mxu2 }
 0x59b   : > { %683 = vrot.lane.b32.xlu2 %v655_v24, %s1033_s18 }
 0x5dd   : > { %v672_v39 = vpop.permute.xlu2 %671 }
 0x5de   : > { %v692_v45 = vsel %vm691_vm13, %v690_v44, %v672_v39 }
 0x5f5   : > { %v684_v49 = vpop.permute.xlu2 %683 }
 0x5fd   : > { %v676_v43 = vpop.permute.xlu1 %675 }
 0x5fe   : > { %v694_v47 = vsel %vm693_vm14, %v692_v45, %v676_v43 }
 0x605   : > { %v680_v48 = vpop.permute.xlu0 %679 }
 0x606   : > { %v696_v26 = vsel %vm695_vm15, %v694_v47, %v680_v48 }
 0x607   : > { %v698_v50 = vsel %vm697_vm0, %v696_v26, %v684_v49 }
 0x608   : > { %v699_v51 = vpack.c.bf16 %v698_v50, %v698_v50 }
 0x60a   : > { %772 = vmatmul.bf16.vlgmr.msrb.gmra.mxu0 %v699_v51 }
 0x687   : > { %v773_v29 = vpop.f32.mrf.mxu0 }
 0x688   : > { %v777_v52 = vadd.f32 %v773_v29, %v1093_v6 }
 0x68a   : > { %778 = vst [vmem:[%s192_s19] sm:$0xff] %v777_v52 }
 0x68f   : > { %v775_v33 = vpop.f32.mrf.mxu0 }
 0x690 PF: > { %s14_s15 = sadd.s32 1, %s1029_s15  }
 0x691   : > { %p11_p4 = scmp.ge.s32.totalorder %s14_s15, 4  }
 0x693   :  { %13 = sbr.rel (!%p11_p4) target bundleno = 1 (0x1), region = 66 }

// kernel: moe_forward.7
= control target key start
LH: loop header
LB: loop body
LE: loop exit
PB: predicated region body
PF: predicated region fallthrough
CT: control target
= control target key end

     0   :  { %9 = vsyncpa [#allocation3], 0  ;;  %s1146_s15 = smov 0   ;;  %s1352_s0 = inlined_call_operand.vmem [shape: f32[2,8,128], index: 0, kind: input, shape index: {}]   ;;  %s1353_s1 = inlined_call_operand.vmem [shape: f32[1,128], index: 1, kind: input, shape index: {}]   ;;  %s1354_s2 = inlined_call_operand.vmem [shape: bf16[128,192], index: 2, kind: input, shape index: {}]   ;;  %s1355_s3 = inlined_call_operand.hbm [shape: bf16[128,128], index: 3, kind: input, shape index: {}]   ;;  %s1356_s4 = inlined_call_operand.vmem [shape: f32[2,8,128], index: 4, kind: output, shape index: {}]  }
   0x1 LB: > { %s152_s18 = sshll.u32 %s1355_s3, 4  ;;  %s861_s19 = sadd.s32 4294967295, %s1107_s15   ;;  %s1107_s15 = sphi %s1146_s15, %s15_s15   ;;  %s153_s18 = int_to_ptr.hbm [resolvable:$true] %s152_s18 }
   0x2   : > { %p863_p0 = scmp.ge.s32.totalorder %s1107_s15, 1  ;;  %p135_p1 = scmp.lt.s32.totalorder %s1107_s15, 3 }
   0x3   : > { %p1008_p2 = scmp.eq.s32.totalorder %s861_s19, 0  ;;  %s1109_s20 = smov [#allocation2]  }
   0x4   : > { %p136_p3 = pnand %p863_p0, %p135_p1  ;;  %s154_s21 = sshll.u32 %s1109_s20, 4  ;;  %s155_s21 = int_to_ptr.vmem [resolvable:$true] %s154_s21 }
   0x5   : > { %s1110_s22 = smov 64   ;;  %s1111_s23 = smov 4  }
   0x6   : > { %p1004_p4 = pneg %p136_p3  ;;  %177 = sbr.rel (%p136_p3) target bundleno = 1682 (0x692), region = 36 }
   0x8   : > { %p1005_p5 = pnand %p1008_p2, %p1004_p4 }
   0xa   : > { %1007 = dma.hbm_to_vmem [thread:$0]  (!%p1005_p5), %s153_s18, 1024, %s155_s21, [#allocation3], %s1110_s22, %s1110_s22, %s1111_s23  }
   0xb   : > { %1102 = dma.done.wait (%p1008_p2), [#allocation3], 1024  }
   0xc   : > { %1104 = vsyncadd (%p1008_p2), [#allocation3], 4294966272  ;;  %p202_p6 = scmp.lt.s32.totalorder %s861_s19, 1  ;;  %v928_v1 = vld [vmem:[%s1354_s2 + $0x70] sm:$0xf]  ;;  %v1112_v17 = vmov 128.0  }
   0xd   : > { %v991_v2 = vld [vmem:[%s1354_s2 + $0x74] sm:$0xf0]  ;;  %v990_v5 = vld [vmem:[%s1354_s2 + $0x74] sm:$0xf]  ;;  %v930_v6 = vld [vmem:[%s1354_s2 + $0x78] sm:$0xf0]  ;;  %1031 = vrcp.f32 %v1112_v17 }
   0xe   : > { %s1358_s19 = smov (!%p202_p6, %s861_s19), 1  ;;  %v929_v4 = vor.u32 %v991_v2, %v928_v1  ;;  %v933_v7 = vor.u32 %v990_v5, %v930_v6  ;;  %v920_v8 = vld [vmem:[%s1354_s2 + $0x60] sm:$0xf]  ;;  %v989_v9 = vld [vmem:[%s1354_s2 + $0x64] sm:$0xf0]  ;;  %vm439_vm4 = vcmask 130048  }
   0xf   : > { %s868_s24 = sshll.u32 %s1358_s19, 3  ;;  %v988_v10 = vld [vmem:[%s1354_s2 + $0x64] sm:$0xf]  ;;  %v921_v11 = vor.u32 %v989_v9, %v920_v8  ;;  %v922_v12 = vld [vmem:[%s1354_s2 + $0x68] sm:$0xf0]  ;;  %s1113_s25 = smov 96  }
  0x10   : > { %s205_s27 = scalar_lea.vmem %s1352_s0, %s868_s24  ;;  %337 = vmatpush.bf16.msra.mxu0 %v929_v4  ;;  %350 = vmatpush.bf16.msra.mxu1 %v933_v7  ;;  %v925_v13 = vor.u32 %v988_v10, %v922_v12  ;;  %v912_v14 = vld [vmem:[%s1354_s2 + $0x50] sm:$0xf]  ;;  %v987_v15 = vld [vmem:[%s1354_s2 + $0x54] sm:$0xf0]  ;;  %v986_v16 = vld [vmem:[%s1354_s2 + $0x54] sm:$0xf]  ;;  %s209_s8 = scalar_lea.vmem %s1356_s4, %s868_s24 }
  0x11   : > { %v1165_v0 = vld [vmem:[%s205_s27] sm:$0xff]  ;;  %v913_v18 = vor.u32 %v987_v15, %v912_v14  ;;  %v914_v19 = vld [vmem:[%s1354_s2 + $0x58] sm:$0xf0]  ;;  %v985_v22 = vld [vmem:[%s1354_s2 + $0x44] sm:$0xf0]  ;;  %s1114_s26 = smov 112  }
  0x12   : > { %v212_v3 = vmul.f32 %v1165_v0, %v1165_v0  ;;  %v917_v20 = vor.u32 %v986_v16, %v914_v19  ;;  %v904_v21 = vld [vmem:[%s1354_s2 + $0x40] sm:$0xf]  ;;  %v984_v23 = vld [vmem:[%s1354_s2 + $0x44] sm:$0xf]  ;;  %v906_v25 = vld [vmem:[%s1354_s2 + $0x48] sm:$0xf0]  ;;  %v363_v19 = vlaneseq }
  0x13   : > { %v905_v24 = vor.u32 %v985_v22, %v904_v21  ;;  %v909_v26 = vor.u32 %v984_v23, %v906_v25  ;;  %v1032_v27 = vpop.eup %1031  ;;  %v896_v28 = vld [vmem:[%s1354_s2 + $0x30] sm:$0xf]  ;;  %v983_v29 = vld [vmem:[%s1354_s2 + $0x34] sm:$0xf0]  ;;  %v982_v30 = vld [vmem:[%s1354_s2 + $0x34] sm:$0xf] }
  0x14   : > { %213 = vadd.xlane.f32.xlu0 %v212_v3  ;;  %338 = vmatpush.bf16.msra.mxu0 %v921_v11  ;;  %v897_v31 = vor.u32 %v983_v29, %v896_v28  ;;  %v898_v32 = vld [vmem:[%s1354_s2 + $0x38] sm:$0xf0]  ;;  %v216_v33 = vmul.f32 128.0, %v1032_v27  ;;  %v888_v35 = vld [vmem:[%s1354_s2 + $0x20] sm:$0xf]  ;;  %vm220_vm0 = vweird.f32 %v1032_v27  ;;  %s1115_s27 = smov 80  }
  0x15   : > { %351 = vmatpush.bf16.msra.mxu1 %v925_v13  ;;  %v901_v34 = vor.u32 %v982_v30, %v898_v32  ;;  %v981_v36 = vld [vmem:[%s1354_s2 + $0x24] sm:$0xf0]  ;;  %v980_v37 = vld [vmem:[%s1354_s2 + $0x24] sm:$0xf]  ;;  %v890_v39 = vld [vmem:[%s1354_s2 + $0x28] sm:$0xf0] }
  0x16   : > { %v889_v38 = vor.u32 %v981_v36, %v888_v35  ;;  %v217_v40 = vsub.f32 1.0, %v216_v33  ;;  %v893_v41 = vor.u32 %v980_v37, %v890_v39  ;;  %v880_v42 = vld [vmem:[%s1354_s2 + $0x10] sm:$0xf]  ;;  %v979_v43 = vld [vmem:[%s1354_s2 + $0x14] sm:$0xf0]  ;;  %v417_v22 = vand.u32 127, %v363_v19 }
  0x17   : > { %v978_v44 = vld [vmem:[%s1354_s2 + $0x14] sm:$0xf]  ;;  %v881_v45 = vor.u32 %v979_v43, %v880_v42  ;;  %v882_v46 = vld [vmem:[%s1354_s2 + $0x18] sm:$0xf0]  ;;  %v872_v47 = vld [vmem:[%s1354_s2] sm:$0xf] }
  0x18   : > { %339 = vmatpush.bf16.msra.mxu0 %v913_v18  ;;  %v977_v48 = vld [vmem:[%s1354_s2 + $0x4] sm:$0xf0]  ;;  %v885_v49 = vor.u32 %v978_v44, %v882_v46  ;;  %v976_v50 = vld [vmem:[%s1354_s2 + $0x4] sm:$0xf]  ;;  %v874_v51 = vld [vmem:[%s1354_s2 + $0x8] sm:$0xf0]  ;;  %v218_v52 = vmul.f32 %v1032_v27, %v217_v40 }
  0x19   : > { %352 = vmatpush.bf16.msra.mxu1 %v917_v20  ;;  %v873_v53 = vor.u32 %v977_v48, %v872_v47  ;;  %v877_v54 = vor.u32 %v976_v50, %v874_v51  ;;  %v1030_v3 = vld [vmem:[%s1353_s1] ss:$0 sm:$0xff]  ;;  %v364_v20 = vshrl.u32 %v363_v19, 7  ;;  %v1116_v25 = vmov -1e+30   ;;  %s1117_s28 = smov 64  }
  0x1a   : > { %v219_v55 = vadd.f32 %v1032_v27, %v218_v52  ;;  %vm476_vm6 = vcmask 64512   ;;  %vm532_vm10 = vcmask 1043456   ;;  %s1118_s29 = smov 48   ;;  %s1119_s30 = smov 16   ;;  %vm704_vm11 = vcmask 261120  }
  0x1b   : > { %v372_v21 = vand.u32 7, %v364_v20  ;;  %v365_v23 = vadd.s32 8, %v364_v20  ;;  %s1120_s5 = smov 32   ;;  %vm706_vm12 = vcmask 392192   ;;  %vm708_vm13 = vcmask 523264  }
  0x1c   : > { %340 = vmatpush.bf16.msra.mxu0 %v905_v24  ;;  %v221_v56 = vsel %vm220_vm0, %v1032_v27, %v219_v55  ;;  %vm710_vm14 = vcmask 654336   ;;  %vm712_vm15 = vcmask 785408   ;;  %vm714_vm0 = vcmask 916480  }
  0x1d   : > { %353 = vmatpush.bf16.msra.mxu1 %v909_v26  ;;  %vm418_vm5 = vcmp.ge.s32.totalorder %v372_v21, %v417_v22  ;;  %v379_v28 = vand.u32 7, %v365_v23 }
  0x1e   : > { %v1284_v26 = vsel %vm418_vm5, 0.0, %v1116_v25 }
  0x1f   : > { %vm419_vm7 = vcmp.ge.s32.totalorder %v379_v28, %v417_v22 }
  0x20   : > { %341 = vmatpush.bf16.msra.mxu0 %v897_v31  ;;  %v366_v31 = vadd.s32 16, %v364_v20  ;;  %v1288_v33 = vsel %vm419_vm7, 0.0, %v1116_v25 }
  0x21   : > { %354 = vmatpush.bf16.msra.mxu1 %v901_v34 }
  0x22   : > { %v386_v35 = vand.u32 7, %v366_v31 }
  0x24   : > { %342 = vmatpush.bf16.msra.mxu0 %v889_v38  ;;  %vm420_vm8 = vcmp.ge.s32.totalorder %v386_v35, %v417_v22  ;;  %v367_v38 = vadd.s32 24, %v364_v20 }
  0x25   : > { %355 = vmatpush.bf16.msra.mxu1 %v893_v41  ;;  %v1292_v40 = vsel %vm420_vm8, 0.0, %v1116_v25 }
  0x26   : > { %v393_v42 = vand.u32 7, %v367_v38 }
  0x28   : > { %343 = vmatpush.bf16.msra.mxu0 %v881_v45  ;;  %vm421_vm9 = vcmp.ge.s32.totalorder %v393_v42, %v417_v22 }
  0x29   : > { %356 = vmatpush.bf16.msra.mxu1 %v885_v49  ;;  %v1296_v46 = vsel %vm421_vm9, 0.0, %v1116_v25 }
  0x2c   : > { %344 = vmatpush.bf16.msra.mxu0 %v873_v53 }
  0x2d   : > { %357 = vmatpush.bf16.msra.mxu1 %v877_v54 }
  0x87   : > { %v214_v57 = vpop.xlane.xlu0 %213 }
  0x88   : > { %v222_v58 = vmul.f32 %v221_v56, %v214_v57 }
  0x8a   : > { %v223_v59 = vadd.f32 1e-06, %v222_v58 }
  0x8c   : > { %1033 = vrsqrt.f32 %v223_v59  ;;  %vm230_vm2 = vweird.f32 %v223_v59 }
  0x92   : > { %v1034_v60 = vpop.eup %1033 }
  0x93   : > { %v225_v61 = vmul.f32 %v1034_v60, %v223_v59  ;;  %vm231_vm1 = vweird.f32 %v1034_v60 }
  0x94   : > { %vm232_vm3 = vmor %vm230_vm2, %vm231_vm1 }
  0x95   : > { %v226_v62 = vmul.f32 %v1034_v60, %v225_v61 }
  0x97   : > { %v227_v63 = vmul.f32 0.5, %v226_v62 }
  0x99   : > { %v228_v1 = vsub.f32 1.5, %v227_v63 }
  0x9b   : > { %v229_v2 = vmul.f32 %v1034_v60, %v228_v1 }
  0x9d   : > { %v233_v4 = vsel %vm232_vm3, %v1034_v60, %v229_v2 }
  0x9e   : > { %v234_v5 = vmul.f32 %v233_v4, %v1165_v0 }
  0xa0   : > { %v239_v6 = vmul.f32 %v1030_v3, %v234_v5 }
  0xa2   : > { %v240_v7 = vpack.c.bf16 %v239_v6, %v239_v6 }
  0xa4   : > { %345 = vmatmul.bf16.vlgmr.msra.gmra.mxu0 %v240_v7  ;;  %358 = vmatmul.bf16.vlgmr.msra.gmra.mxu1 %v240_v7 }
 0x121   : > { %v346_v8 = vpop.f32.mrf.mxu0  ;;  %v359_v9 = vpop.f32.mrf.mxu1 }
 0x122   : > { %v1269_v10 = vpack.c.bf16 %v359_v9, %v359_v9  ;;  %430 = vrot.lane.b32.xlu1 %v346_v8, %s1113_s25  ;;  %427 = vrot.lane.b32.xlu0 %v346_v8, %s1114_s26 }
 0x124   : > { %v447_v11 = vsel %vm439_vm4, %v1269_v10, 0 }
 0x125   : > { %456 = vmatpush.bf16.xpose.msra.mxu2 %v447_v11 }
 0x129   : > { %v348_v12 = vpop.f32.mrf.mxu0  ;;  %v361_v13 = vpop.f32.mrf.mxu1 }
 0x12a   : > { %433 = vrot.lane.b32.xlu1 %v346_v8, %s1115_s27 }
 0x194   : > { %v428_v14 = vpop.permute.xlu0 %427  ;;  %v431_v16 = vpop.permute.xlu1 %430 }
 0x195   : > { %v1276_v15 = vpack.c.bf16 %v428_v14, %v346_v8 }
 0x197   : > { %934 = vmatmul.msk.bf16.vlgmr.msra.gmra.mxu2 %vm439_vm4, %v1276_v15 }
 0x19c   : > { %v434_v17 = vpop.permute.xlu1 %433 }
 0x19d   : > { %v1280_v18 = vpack.c.bf16 %v434_v17, %v431_v16 }
 0x1a7   : > { %935 = vmatmul.msk.bf16.gmra.mxu2 %vm439_vm4, %v1280_v18 }
 0x21a   : > { %v458_v24 = vpop.f32.mrf.mxu2 }
 0x21b   : > { %v468_v27 = vmul.f32 0.25, %v458_v24 }
 0x21d   : > { %v472_v29 = vadd.f32 %v468_v27, %v1284_v26 }
 0x21f   : > { %v477_v30 = vsel %vm476_vm6, %v472_v29, -inf }
 0x220   : > { %478 = vmax.xlane.f32.xlu2 %v477_v30 }
 0x222   : > { %v460_v32 = vpop.f32.mrf.mxu2 }
 0x223   : > { %v469_v34 = vmul.f32 0.25, %v460_v32 }
 0x225   : > { %v473_v36 = vadd.f32 %v469_v34, %v1288_v33 }
 0x227   : > { %v480_v37 = vsel %vm476_vm6, %v473_v36, -inf }
 0x228   : > { %481 = vmax.xlane.f32.xlu2 %v480_v37 }
 0x22a   : > { %v463_v39 = vpop.f32.mrf.mxu2 }
 0x22b   : > { %v470_v41 = vmul.f32 0.25, %v463_v39 }
 0x22d   : > { %v474_v43 = vadd.f32 %v470_v41, %v1292_v40 }
 0x22f   : > { %v483_v44 = vsel %vm476_vm6, %v474_v43, -inf }
 0x230   : > { %484 = vmax.xlane.f32.xlu1 %v483_v44 }
 0x232   : > { %v465_v45 = vpop.f32.mrf.mxu2 }
 0x233   : > { %v471_v47 = vmul.f32 0.25, %v465_v45 }
 0x235   : > { %v475_v48 = vadd.f32 %v471_v47, %v1296_v46 }
 0x237   : > { %v486_v49 = vsel %vm476_vm6, %v475_v48, -inf }
 0x238   : > { %487 = vmax.xlane.f32.xlu2 %v486_v49 }
 0x293   : > { %v479_v50 = vpop.xlane.xlu2 %478 }
 0x294   : > { %v489_v51 = vsub.f32 %v472_v29, %v479_v50 }
 0x296   : > { %v493_v52 = vmul.f32 1.442695, %v489_v51 }
 0x298   : > { %1035 = vpow2.f32 %v493_v52 }
 0x29b   : > { %v482_v53 = vpop.xlane.xlu2 %481 }
 0x29c   : > { %v490_v54 = vsub.f32 %v473_v36, %v482_v53 }
 0x29e   : > { %v1036_v55 = vpop.eup %1035  ;;  %v495_v56 = vmul.f32 1.442695, %v490_v54 }
 0x29f   : > { %v501_v57 = vsel %vm476_vm6, %v1036_v55, 0.0 }
 0x2a0   : > { %1037 = vpow2.f32 %v495_v56  ;;  %502 = vadd.xlane.f32.xlu2 %v501_v57 }
 0x2a3   : > { %v485_v2 = vpop.xlane.xlu1 %484 }
 0x2a4   : > { %v491_v3 = vsub.f32 %v474_v43, %v485_v2 }
 0x2a6   : > { %v1038_v58 = vpop.eup %1037  ;;  %v497_v4 = vmul.f32 1.442695, %v491_v3 }
 0x2a7   : > { %v504_v59 = vsel %vm476_vm6, %v1038_v58, 0.0 }
 0x2a8   : > { %505 = vadd.xlane.f32.xlu0 %v504_v59 }
 0x2ab   : > { %v488_v60 = vpop.xlane.xlu2 %487 }
 0x2ac   : > { %v492_v61 = vsub.f32 %v475_v48, %v488_v60 }
 0x2ae   : > { %v499_v62 = vmul.f32 1.442695, %v492_v61 }
 0x2b0   : > { %1039 = vpow2.f32 %v499_v62 }
 0x2b1   : > { %1041 = vpow2.f32 %v497_v4 }
 0x2b6   : > { %v1040_v63 = vpop.eup %1039 }
 0x2b7   : > { %v510_v1 = vsel %vm476_vm6, %v1040_v63, 0.0  ;;  %v1042_v5 = vpop.eup %1041 }
 0x2b8   : > { %524 = vrot.lane.b32.xlu2 %v1269_v10, %s1113_s25  ;;  %511 = vadd.xlane.f32.xlu1 %v510_v1  ;;  %v507_v6 = vsel %vm476_vm6, %v1042_v5, 0.0 }
 0x2bc   : > { %557 = vrot.lane.b32.xlu0 %v1276_v15, %s1117_s28 }
 0x2c4   : > { %559 = vrot.lane.b32.xlu0 %v1280_v18, %s1117_s28 }
 0x2d1   : > { %561 = vrot.lane.b32.xlu1 %v1269_v10, %s1114_s26 }
 0x2e1   : > { %508 = vadd.xlane.f32.xlu2 %v507_v6 }
 0x313   : > { %v503_v7 = vpop.xlane.xlu2 %502 }
 0x314   : > { %1043 = vrcp.f32 %v503_v7 }
 0x31a   : > { %v1044_v12 = vpop.eup %1043 }
 0x31b   : > { %v506_v8 = vpop.xlane.xlu0 %505  ;;  %v525_v9 = vpop.permute.xlu2 %524  ;;  %v517_v14 = vmul.f32 %v1044_v12, %v1036_v55 }
 0x31c   : > { %1045 = vrcp.f32 %v506_v8  ;;  %v534_v11 = vsel %vm532_vm10, %v525_v9, 0 }
 0x31d   : > { %543 = vmatpush.bf16.msra.mxu3 %v534_v11 }
 0x322   : > { %v1046_v13 = vpop.eup %1045 }
 0x323   : > { %v518_v15 = vmul.f32 %v1046_v13, %v1038_v58 }
 0x325   : > { %v521_v16 = vpack.c.bf16 %v518_v15, %v517_v14 }
 0x327   : > { %936 = vmatmul.msk.bf16.vlgmr.msra.gmra.mxu3 %vm476_vm6, %v521_v16 }
 0x32b   : > { %v512_v17 = vpop.xlane.xlu1 %511 }
 0x32c   : > { %1047 = vrcp.f32 %v512_v17 }
 0x32e   : > { %v558_v27 = vpop.permute.xlu0 %557 }
 0x332   : > { %v1048_v21 = vpop.eup %1047 }
 0x333   : > { %v520_v24 = vmul.f32 %v1048_v21, %v1040_v63 }
 0x336   : > { %v560_v28 = vpop.permute.xlu0 %559 }
 0x343   : > { %v562_v18 = vpop.permute.xlu1 %561 }
 0x344   : > { %v570_v19 = vsel %vm439_vm4, %v562_v18, 0 }
 0x345   : > { %579 = vmatpush.bf16.xpose.msrb.mxu3 %v570_v19 }
 0x354   : > { %v509_v20 = vpop.xlane.xlu2 %508 }
 0x355   : > { %1049 = vrcp.f32 %v509_v20 }
 0x35b   : > { %v1050_v22 = vpop.eup %1049 }
 0x35c   : > { %v519_v23 = vmul.f32 %v1050_v22, %v1042_v5 }
 0x35e   : > { %v522_v25 = vpack.c.bf16 %v520_v24, %v519_v23 }
 0x360   : > { %937 = vmatmul.msk.bf16.gmra.mxu3 %vm476_vm6, %v522_v25  ;;  %v999_v25 = vld [vmem:[#allocation2 + $0x38] sm:$0xff] }
 0x361   : > { %781 = vmatpush.bf16.msrb.mxu0 %v999_v25 }
 0x370   : > { %938 = vmatmul.msk.bf16.vlgmr.msrb.gmra.mxu3 %vm439_vm4, %v558_v27  ;;  %v998_v27 = vld [vmem:[#allocation2 + $0x30] sm:$0xff] }
 0x371   : > { %782 = vmatpush.bf16.msrb.mxu0 %v998_v27 }
 0x380   : > { %939 = vmatmul.msk.bf16.gmra.mxu3 %vm439_vm4, %v560_v28  ;;  %v997_v28 = vld [vmem:[#allocation2 + $0x28] sm:$0xff] }
 0x381   : > { %783 = vmatpush.bf16.msrb.mxu0 %v997_v28 }
 0x3aa   : > { %v1318_v29 = vpop.f32.mrf.mxu3 }
 0x3b2   : > { %v547_v30 = vpop.f32.mrf.mxu3 }
 0x3e3   : > { %v550_v31 = vpop.f32.mrf.mxu3 }
 0x3eb   : > { %v552_v32 = vpop.f32.mrf.mxu3 }
 0x3f3   : > { %v581_v34 = vpop.f32.mrf.mxu3 }
 0x3f4   : > { %v591_v35 = vmul.f32 0.25, %v581_v34  ;;  %v993_v34 = vld [vmem:[#allocation2 + $0x8] sm:$0xff] }
 0x3f6   : > { %v595_v36 = vadd.f32 %v591_v35, %v1284_v26  ;;  %v992_v35 = vld [vmem:[#allocation2] sm:$0xff] }
 0x3f8   : > { %v599_v37 = vsel %vm476_vm6, %v595_v36, -inf }
 0x3f9   : > { %600 = vmax.xlane.f32.xlu1 %v599_v37 }
 0x3fb   : > { %v583_v38 = vpop.f32.mrf.mxu3 }
 0x3fc   : > { %v592_v39 = vmul.f32 0.25, %v583_v38 }
 0x3fe   : > { %v596_v41 = vadd.f32 %v592_v39, %v1288_v33 }
 0x400   : > { %v602_v42 = vsel %vm476_vm6, %v596_v41, -inf }
 0x401   : > { %603 = vmax.xlane.f32.xlu2 %v602_v42 }
 0x403   : > { %v586_v43 = vpop.f32.mrf.mxu3 }
 0x404   : > { %v593_v44 = vmul.f32 0.25, %v586_v43 }
 0x406   : > { %v597_v45 = vadd.f32 %v593_v44, %v1292_v40 }
 0x408   : > { %v605_v47 = vsel %vm476_vm6, %v597_v45, -inf }
 0x409   : > { %606 = vmax.xlane.f32.xlu0 %v605_v47 }
 0x40b   : > { %v588_v48 = vpop.f32.mrf.mxu3 }
 0x40c   : > { %v594_v49 = vmul.f32 0.25, %v588_v48 }
 0x40e   : > { %v598_v26 = vadd.f32 %v594_v49, %v1296_v46 }
 0x410   : > { %v608_v50 = vsel %vm476_vm6, %v598_v26, -inf }
 0x411   : > { %609 = vmax.xlane.f32.xlu2 %v608_v50 }
 0x46c   : > { %v601_v51 = vpop.xlane.xlu1 %600 }
 0x46d   : > { %v611_v52 = vsub.f32 %v595_v36, %v601_v51 }
 0x46f   : > { %v615_v33 = vmul.f32 1.442695, %v611_v52 }
 0x471   : > { %1051 = vpow2.f32 %v615_v33 }
 0x474   : > { %v604_v53 = vpop.xlane.xlu2 %603 }
 0x475   : > { %v612_v54 = vsub.f32 %v596_v41, %v604_v53 }
 0x477   : > { %v1052_v55 = vpop.eup %1051  ;;  %v617_v56 = vmul.f32 1.442695, %v612_v54 }
 0x478   : > { %v623_v40 = vsel %vm476_vm6, %v1052_v55, 0.0 }
 0x479   : > { %1053 = vpow2.f32 %v617_v56  ;;  %624 = vadd.xlane.f32.xlu2 %v623_v40 }
 0x47c   : > { %v607_v57 = vpop.xlane.xlu0 %606 }
 0x47d   : > { %v613_v58 = vsub.f32 %v597_v45, %v607_v57 }
 0x47f   : > { %v1054_v59 = vpop.eup %1053  ;;  %v619_v60 = vmul.f32 1.442695, %v613_v58 }
 0x480   : > { %v626_v46 = vsel %vm476_vm6, %v1054_v59, 0.0 }
 0x481   : > { %1055 = vpow2.f32 %v619_v60  ;;  %627 = vadd.xlane.f32.xlu2 %v626_v46 }
 0x484   : > { %v610_v61 = vpop.xlane.xlu2 %609 }
 0x485   : > { %v614_v62 = vsub.f32 %v598_v26, %v610_v61 }
 0x487   : > { %v1056_v63 = vpop.eup %1055  ;;  %v621_v1 = vmul.f32 1.442695, %v614_v62 }
 0x488   : > { %v629_v2 = vsel %vm476_vm6, %v1056_v63, 0.0 }
 0x489   : > { %1057 = vpow2.f32 %v621_v1  ;;  %630 = vadd.xlane.f32.xlu1 %v629_v2 }
 0x48f   : > { %v1058_v3 = vpop.eup %1057 }
 0x490   : > { %v632_v4 = vsel %vm476_vm6, %v1058_v3, 0.0 }
 0x491   : > { %633 = vadd.xlane.f32.xlu0 %v632_v4 }
 0x499   : > { %645 = vrot.lane.b32.xlu2 %v1269_v10, %s1115_s27 }
 0x4a1   : > { %684 = vrot.lane.b32.xlu2 %v552_v32, %s1118_s29  ;;  %v994_v32 = vld [vmem:[#allocation2 + $0x10] sm:$0xff] }
 0x4a2   : > { %676 = vrot.lane.b32.xlu1 %v547_v30, %s1119_s30  ;;  %v996_v30 = vld [vmem:[#allocation2 + $0x20] sm:$0xff] }
 0x4a3   : > { %784 = vmatpush.bf16.msrb.mxu0 %v996_v30 }
 0x4a5   : > { %680 = vrot.lane.b32.xlu0 %v550_v31, %s1120_s5  ;;  %v995_v31 = vld [vmem:[#allocation2 + $0x18] sm:$0xff] }
 0x4a7   : > { %785 = vmatpush.bf16.msrb.mxu0 %v995_v31 }
 0x4ab   : > { %786 = vmatpush.bf16.msrb.mxu0 %v994_v32 }
 0x4af   : > { %787 = vmatpush.bf16.msrb.mxu0 %v993_v34 }
 0x4b3   : > { %788 = vmatpush.bf16.msrb.mxu0 %v992_v35 }
 0x4ec   : > { %v625_v5 = vpop.xlane.xlu2 %624 }
 0x4ed   : > { %1059 = vrcp.f32 %v625_v5 }
 0x4f3   : > { %v1060_v7 = vpop.eup %1059 }
 0x4f4   : > { %v628_v6 = vpop.xlane.xlu2 %627  ;;  %v639_v9 = vmul.f32 %v1060_v7, %v1052_v55 }
 0x4f5   : > { %1061 = vrcp.f32 %v628_v6 }
 0x4fb   : > { %v1062_v8 = vpop.eup %1061 }
 0x4fc   : > { %v640_v11 = vmul.f32 %v1062_v8, %v1054_v59  ;;  %v646_v12 = vpop.permute.xlu2 %645  ;;  %v631_v10 = vpop.xlane.xlu1 %630 }
 0x4fd   : > { %v654_v13 = vsel %vm532_vm10, %v646_v12, 0  ;;  %1063 = vrcp.f32 %v631_v10 }
 0x4fe   : > { %663 = vmatpush.bf16.msrb.mxu2 %v654_v13  ;;  %v643_v14 = vpack.c.bf16 %v640_v11, %v639_v9 }
 0x501   : > { %940 = vmatmul.msk.bf16.vlgmr.msrb.gmra.mxu2 %vm476_vm6, %v643_v14 }
 0x503   : > { %v1064_v16 = vpop.eup %1063 }
 0x504   : > { %v634_v15 = vpop.xlane.xlu0 %633  ;;  %v641_v18 = vmul.f32 %v1064_v16, %v1056_v63  ;;  %v685_v36 = vpop.permute.xlu2 %684 }
 0x505   : > { %1065 = vrcp.f32 %v634_v15 }
 0x50b   : > { %v1066_v17 = vpop.eup %1065 }
 0x50c   : > { %v642_v19 = vmul.f32 %v1066_v17, %v1058_v3 }
 0x50e   : > { %v644_v20 = vpack.c.bf16 %v642_v19, %v641_v18 }
 0x511   : > { %941 = vmatmul.msk.bf16.gmra.mxu2 %vm476_vm6, %v644_v20 }
 0x514   : > { %v677_v37 = vpop.permute.xlu1 %676 }
 0x515   : > { %v703_v41 = vsel %vm439_vm4, %v1318_v29, %v677_v37 }
 0x517   : > { %v681_v38 = vpop.permute.xlu0 %680 }
 0x518   : > { %v705_v42 = vsel %vm704_vm11, %v703_v41, %v681_v38 }
 0x519   : > { %v707_v44 = vsel %vm706_vm12, %v705_v42, %v685_v36 }
 0x584   : > { %v665_v21 = vpop.f32.mrf.mxu2 }
 0x585   : > { %688 = vrot.lane.b32.xlu2 %v665_v21, %s1117_s28 }
 0x58c   : > { %v667_v22 = vpop.f32.mrf.mxu2 }
 0x58d   : > { %692 = vrot.lane.b32.xlu1 %v667_v22, %s1115_s27 }
 0x594   : > { %v670_v23 = vpop.f32.mrf.mxu2 }
 0x595   : > { %696 = vrot.lane.b32.xlu0 %v670_v23, %s1113_s25 }
 0x59c   : > { %v672_v24 = vpop.f32.mrf.mxu2 }
 0x59d   : > { %700 = vrot.lane.b32.xlu2 %v672_v24, %s1114_s26 }
 0x5df   : > { %v689_v39 = vpop.permute.xlu2 %688 }
 0x5e0   : > { %v709_v45 = vsel %vm708_vm13, %v707_v44, %v689_v39 }
 0x5f7   : > { %v701_v49 = vpop.permute.xlu2 %700 }
 0x5ff   : > { %v693_v43 = vpop.permute.xlu1 %692 }
 0x600   : > { %v711_v47 = vsel %vm710_vm14, %v709_v45, %v693_v43 }
 0x607   : > { %v697_v48 = vpop.permute.xlu0 %696 }
 0x608   : > { %v713_v26 = vsel %vm712_vm15, %v711_v47, %v697_v48 }
 0x609   : > { %v715_v50 = vsel %vm714_vm0, %v713_v26, %v701_v49 }
 0x60a   : > { %v716_v51 = vpack.c.bf16 %v715_v50, %v715_v50 }
 0x60c   : > { %789 = vmatmul.bf16.vlgmr.msrb.gmra.mxu0 %v716_v51 }
 0x689   : > { %v790_v29 = vpop.f32.mrf.mxu0 }
 0x68a   : > { %v794_v52 = vadd.f32 %v790_v29, %v1165_v0 }
 0x68c   : > { %795 = vst [vmem:[%s209_s8] sm:$0xff] %v794_v52 }
 0x691   : > { %v792_v33 = vpop.f32.mrf.mxu0 }
 0x692 PF: > { %s15_s15 = sadd.s32 1, %s1107_s15  }
 0x693   : > { %p12_p7 = scmp.ge.s32.totalorder %s15_s15, 4  }
 0x695   :  { %14 = sbr.rel (!%p12_p7) target bundleno = 1 (0x1), region = 71 }
 0x69a   :  { %815 = vsyncpa [#allocation3], 1 }
 0x69b   :  { %817 = vsyncpa [#allocation3 + $0x1], 1 }

</bundles_post_ra>
